<compile_context>
chip_gen: v7x
topology: tpu7x:2x2x1
jax: 0.10.0
libtpu: 0.0.40
codegen_flags: <defaults>
</compile_context>

<pallas_src>
import functools

import numpy as np
import jax
import jax.numpy as jnp
from jax import lax
from jax.experimental import pallas as pl
from jax.experimental.pallas import tpu as pltpu


def _avgpool_kernel(x_ref, o_ref, *, bt, h, w, h_out, w_out, pad_lo):
    """One tile of `bt` fused (N*C*T) frames, kept in native NCDHW row order.

    x_ref: (bt*H, W)        -- bt frames, rows contiguous per frame
    o_ref: (bt*H_out, W_out)
    """
    f32 = jnp.float32

    # ---- hoisted constants -------------------------------------------------
    # W-pool matrix P[w, j] = 1/col_count(j) if input column w is a valid tap of
    # output column j (taps are 2j - pad_lo + {0,1,2} clipped to [0, W)), else 0.
    wi = lax.broadcasted_iota(jnp.int32, (w, w_out), 0)
    ji = lax.broadcasted_iota(jnp.int32, (w, w_out), 1)
    cbase = 2 * ji - pad_lo
    hit = ((wi >= cbase) & (wi <= cbase + 2)).astype(f32)
    col_cnt = ((cbase >= 0).astype(f32) + 1.0
               + ((cbase + 2) <= (w - 1)).astype(f32))
    p_w = hit / col_cnt                                     # (W, W_out)

    # 1/row_count per output row (3 inside, 2 or 1 at the H borders).
    ri = lax.broadcasted_iota(jnp.int32, (h_out, w_out), 0)
    rbase = 2 * ri - pad_lo
    row_inv = 1.0 / ((rbase >= 0).astype(f32) + 1.0
                     + ((rbase + 2) <= (h - 1)).astype(f32))  # (H_out, W_out)

    # ---- W direction: one MXU matmul over every input row of the tile ------
    y = jnp.dot(x_ref[...].astype(f32), p_w,
                preferred_element_type=f32)                 # (bt*H, W_out)

    # ---- H direction: 3-tap / stride-2 vertical sum, fully vectorised ------
    y3 = y.reshape(bt, h, w_out)
    if pad_lo:                                              # odd H: implicit zero row on top
        y3 = jnp.concatenate([jnp.zeros((bt, 1, w_out), f32), y3], axis=1)
    # y3 now has exactly 2*H_out rows per frame; rows (2i, 2i+1) are taps 0/1 of
    # output row i, and tap 2 equals tap 0 of output row i+1 (zero past the end).
    pairs = y3.reshape(bt, h_out, 2, w_out)
    t0 = pairs[:, :, 0, :]                                  # rows 2i      (bt, H_out, W_out)
    t1 = pairs[:, :, 1, :]                                  # rows 2i + 1
    if h_out > 1:
        t2 = jnp.concatenate(
            [t0[:, 1:, :], jnp.zeros((bt, 1, w_out), f32)], axis=1)
    else:
        t2 = jnp.zeros((bt, 1, w_out), f32)

    out = (t0 + t1 + t2) * row_inv                          # broadcast over bt
    o_ref[...] = out.reshape(bt * h_out, w_out).astype(o_ref.dtype)


def _tpu_budgets():
    """Generation-aware VMEM budget / TensorCore count, with safe fallbacks."""
    vmem_cap = 64 * 1024 * 1024          # conservative (v7x per-core) fallback
    num_cores = 1
    try:
        info = pltpu.get_tpu_info()
        vmem_cap = int(getattr(info, "vmem_capacity_bytes", vmem_cap) or vmem_cap)
        for attr in ("num_cores", "core_count", "tensorcores_per_chip",
                     "num_tensorcores"):
            val = getattr(info, attr, None)
            if val:
                num_cores = int(val)
                break
    except Exception:
        pass
    if num_cores == 1:
        try:
            num_cores = int(getattr(jax.devices()[0], "num_cores", 1) or 1)
        except Exception:
            pass
    # Scoped VMEM limit for this kernel: generous on 128 MiB chips (v5e/v6e),
    # capped well below the 64 MiB per-core VMEM of v7x.
    vmem_limit = max(32 * 1024 * 1024,
                     min((vmem_cap * 5) // 8, 96 * 1024 * 1024))
    return vmem_limit, num_cores


def _choose_batch_tile(n_frames, h, w, itemsize, vmem_limit, num_cores):
    """Frames (one (H, W) slice of the fused N*C*T batch) per grid step."""
    # Working set per frame: double-buffered input block plus the f32
    # intermediates (y, taps, out) the kernel materialises (~4 * H*W f32).
    frame_cost = h * w * (2 * itemsize + 16)
    budget = (vmem_limit * 3) // 4
    max_bt = max(8, (budget // max(frame_cost, 1)) // 8 * 8)
    bt = min(n_frames, max_bt)
    if num_cores > 1 and n_frames > 8:
        # Only split when there is more than one TensorCore (v7x / megacore);
        # on single-core chips the grid is a serial loop and splitting a block
        # that already fits just adds per-step overhead.
        per_core = -(-n_frames // num_cores)                # cdiv
        per_core = max(8, -(-per_core // 8) * 8)            # round up to 8
        bt = min(bt, per_core)
    if bt < n_frames:
        bt = max(8, (bt // 8) * 8)   # keep (bt*H, W)/(bt*H_out, W_out) 8-aligned
    return bt


def _tf_avg_pool3d_impl(x):
    """x: (N, C, T, H, W) -> (N, C, T, ceil(H/2), ceil(W/2)), matching TfAvgPool3D."""
    n, c, t, h, w = x.shape
    if h != w:
        raise RuntimeError('only same shape for h and w are supported by avg with tf_like')

    h_out = (h + 1) // 2
    w_out = (w + 1) // 2
    pad_lo = 1 if h % 2 else 0
    b = n * c * t

    # Native NCDHW order throughout: this reshape (and the one on the way out)
    # is a free, contiguous metadata change -- no HBM relayout pass.
    x2 = x.reshape(b * h, w)

    vmem_limit, num_cores = _tpu_budgets()
    bt = _choose_batch_tile(b, h, w, x.dtype.itemsize, vmem_limit, num_cores)
    grid = (pl.cdiv(b, bt),)

    kernel = functools.partial(_avgpool_kernel, bt=bt, h=h, w=w,
                               h_out=h_out, w_out=w_out, pad_lo=pad_lo)

    in_bytes = b * h * w * x.dtype.itemsize
    out_bytes = b * h_out * w_out * x.dtype.itemsize
    cost = pl.CostEstimate(
        flops=2 * b * h * w * w_out + 4 * b * h_out * w_out,
        transcendentals=0,
        bytes_accessed=in_bytes + out_bytes)

    out2 = pl.pallas_call(
        kernel,
        out_shape=jax.ShapeDtypeStruct((b * h_out, w_out), x.dtype),
        grid=grid,
        in_specs=[pl.BlockSpec((bt * h, w), lambda i: (i, 0))],
        out_specs=pl.BlockSpec((bt * h_out, w_out), lambda i: (i, 0)),
        compiler_params=pltpu.CompilerParams(
            dimension_semantics=("parallel",),
            vmem_limit_bytes=int(vmem_limit)),
        cost_estimate=cost,
    )(x2)

    return out2.reshape(n, c, t, h_out, w_out)


tf_avg_pool3d = jax.jit(_tf_avg_pool3d_impl)


def _reference_numpy(x):
    """Literal numpy re-implementation of the PyTorch module's forward."""
    N, C, T, H, W = x.shape
    assert H == W
    if H % 2 != 0:  # odd: count_include_pad=False with implicit padding (1, 1)
        xp = np.pad(x, ((0, 0), (0, 0), (0, 0), (1, 1), (1, 1)))
        Ho = (H + 1) // 2
        out = np.zeros((N, C, T, Ho, Ho), np.float32)
        vm = np.pad(np.ones((H, W), np.float32), ((1, 1), (1, 1)))
        for i in range(Ho):
            for j in range(Ho):
                win = xp[..., 2 * i:2 * i + 3, 2 * j:2 * j + 3]
                cnt = vm[2 * i:2 * i + 3, 2 * j:2 * j + 3].sum()
                out[..., i, j] = win.sum(axis=(-1, -2)) / cnt
    else:           # even: explicit bottom/right pad, /9, then 9/6 edge rescale
        xp = np.pad(x, ((0, 0), (0, 0), (0, 0), (0, 1), (0, 1)))
        Ho = H // 2
        out = np.zeros((N, C, T, Ho, Ho), np.float32)
        for i in range(Ho):
            for j in range(Ho):
                out[..., i, j] = xp[..., 2 * i:2 * i + 3, 2 * j:2 * j + 3].mean(axis=(-1, -2))
        out[..., -1] = out[..., -1] * 9 / 6
        out[..., -1, :] = out[..., -1, :] * 9 / 6
    return out


if __name__ == "__main__":
    key = jax.random.PRNGKey(0)
    k1, k2 = jax.random.split(key)

    # Even H/W branch (explicit bottom/right pad + 9/6 edge rescale path).
    x_even = jax.random.normal(k1, (2, 4, 3, 8, 8), dtype=jnp.float32)
    y_even = jax.block_until_ready(tf_avg_pool3d(x_even))
    np.testing.assert_allclose(np.asarray(y_even),
                               _reference_numpy(np.asarray(x_even)),
                               rtol=1e-5, atol=1e-5)

    # Odd H/W branch (count_include_pad=False path).
    x_odd = jax.random.normal(k2, (2, 4, 3, 9, 9), dtype=jnp.float32)
    y_odd = jax.block_until_ready(tf_avg_pool3d(x_odd))
    np.testing.assert_allclose(np.asarray(y_odd),
                               _reference_numpy(np.asarray(x_odd)),
                               rtol=1e-5, atol=1e-5)

    print("KERNEL_OK")
</pallas_src>

<mosaic_0001>
module attributes {stable_mosaic.version = 11 : i64} {
  func.func @_avgpool_kernel(%arg0: i32, %arg1: memref<192x8xf32, #tpu.memory_space<vmem>>, %arg2: memref<96x4xf32, #tpu.memory_space<vmem>>) attributes {dimension_semantics = [#tpu.dimension_semantics<parallel>], iteration_bounds = array<i64: 1>, scalar_prefetch = 0 : i64, scratch_operands = 0 : i64, tpu.core_type = #tpu.core_type<tc>, window_params = [{transform_indices = @transform_0, window_bounds = array<i64: 192, 8>}, {transform_indices = @transform_1, window_bounds = array<i64: 96, 4>}]} {
    %0 = tpu.iota {dimensions = array<i32: 0>} : vector<8x4xi32>
    %1 = tpu.iota {dimensions = array<i32: 1>} : vector<8x4xi32>
    %c2_i32 = arith.constant 2 : i32
    %2 = vector.broadcast %c2_i32 : i32 to vector<8x4xi32>
    %3 = arith.muli %2, %1 : vector<8x4xi32>
    %c0_i32 = arith.constant 0 : i32
    %4 = vector.broadcast %c0_i32 : i32 to vector<8x4xi32>
    %5 = arith.subi %3, %4 : vector<8x4xi32>
    %6 = arith.cmpi sge, %0, %5 : vector<8x4xi32>
    %c2_i32_0 = arith.constant 2 : i32
    %7 = vector.broadcast %c2_i32_0 : i32 to vector<8x4xi32>
    %8 = arith.addi %5, %7 : vector<8x4xi32>
    %9 = arith.cmpi sle, %0, %8 : vector<8x4xi32>
    %10 = arith.andi %6, %9 : vector<8x4xi1>
    %11 = arith.extui %10 : vector<8x4xi1> to vector<8x4xi32>
    %12 = arith.sitofp %11 : vector<8x4xi32> to vector<8x4xf32>
    %c0_i32_1 = arith.constant 0 : i32
    %13 = vector.broadcast %c0_i32_1 : i32 to vector<8x4xi32>
    %14 = arith.cmpi sge, %5, %13 : vector<8x4xi32>
    %15 = arith.extui %14 : vector<8x4xi1> to vector<8x4xi32>
    %16 = arith.sitofp %15 : vector<8x4xi32> to vector<8x4xf32>
    %cst = arith.constant 1.000000e+00 : f32
    %17 = vector.broadcast %cst : f32 to vector<8x4xf32>
    %18 = arith.addf %16, %17 : vector<8x4xf32>
    %c2_i32_2 = arith.constant 2 : i32
    %19 = vector.broadcast %c2_i32_2 : i32 to vector<8x4xi32>
    %20 = arith.addi %5, %19 : vector<8x4xi32>
    %c7_i32 = arith.constant 7 : i32
    %21 = vector.broadcast %c7_i32 : i32 to vector<8x4xi32>
    %22 = arith.cmpi sle, %20, %21 : vector<8x4xi32>
    %23 = arith.extui %22 : vector<8x4xi1> to vector<8x4xi32>
    %24 = arith.sitofp %23 : vector<8x4xi32> to vector<8x4xf32>
    %25 = arith.addf %18, %24 : vector<8x4xf32>
    %26 = arith.divf %12, %25 : vector<8x4xf32>
    %27 = tpu.iota {dimensions = array<i32: 0>} : vector<4x4xi32>
    %c2_i32_3 = arith.constant 2 : i32
    %28 = vector.broadcast %c2_i32_3 : i32 to vector<4x4xi32>
    %29 = arith.muli %28, %27 : vector<4x4xi32>
    %c0_i32_4 = arith.constant 0 : i32
    %30 = vector.broadcast %c0_i32_4 : i32 to vector<4x4xi32>
    %31 = arith.subi %29, %30 : vector<4x4xi32>
    %c0_i32_5 = arith.constant 0 : i32
    %32 = vector.broadcast %c0_i32_5 : i32 to vector<4x4xi32>
    %33 = arith.cmpi sge, %31, %32 : vector<4x4xi32>
    %34 = arith.extui %33 : vector<4x4xi1> to vector<4x4xi32>
    %35 = arith.sitofp %34 : vector<4x4xi32> to vector<4x4xf32>
    %cst_6 = arith.constant 1.000000e+00 : f32
    %36 = vector.broadcast %cst_6 : f32 to vector<4x4xf32>
    %37 = arith.addf %35, %36 : vector<4x4xf32>
    %c2_i32_7 = arith.constant 2 : i32
    %38 = vector.broadcast %c2_i32_7 : i32 to vector<4x4xi32>
    %39 = arith.addi %31, %38 : vector<4x4xi32>
    %c7_i32_8 = arith.constant 7 : i32
    %40 = vector.broadcast %c7_i32_8 : i32 to vector<4x4xi32>
    %41 = arith.cmpi sle, %39, %40 : vector<4x4xi32>
    %42 = arith.extui %41 : vector<4x4xi1> to vector<4x4xi32>
    %43 = arith.sitofp %42 : vector<4x4xi32> to vector<4x4xf32>
    %44 = arith.addf %37, %43 : vector<4x4xf32>
    %cst_9 = arith.constant 1.000000e+00 : f32
    %45 = vector.broadcast %cst_9 : f32 to vector<4x4xf32>
    %46 = arith.divf %45, %44 : vector<4x4xf32>
    %c0 = arith.constant 0 : index
    %c0_10 = arith.constant 0 : index
    %47 = vector.load %arg1[%c0, %c0_10] : memref<192x8xf32, #tpu.memory_space<vmem>>, vector<192x8xf32>
    %cst_11 = arith.constant dense<0.000000e+00> : vector<192x4xf32>
    %48 = tpu.matmul %47, %26, %cst_11 {dimension_numbers = #tpu.dot_dimension_numbers<[1], [0], [0], [1], [0, 0, 1, 1], [], []>} : vector<192x8xf32>, vector<8x4xf32>, vector<192x4xf32> -> vector<192x4xf32>
    %49 = vector.shape_cast %48 : vector<192x4xf32> to vector<24x8x4xf32>
    %50 = vector.shape_cast %49 : vector<24x8x4xf32> to vector<24x4x2x4xf32>
    %51 = vector.extract_strided_slice %50 {offsets = [0, 0, 0, 0], sizes = [24, 4, 1, 4], strides = [1, 1, 1, 1]} : vector<24x4x2x4xf32> to vector<24x4x1x4xf32>
    %52 = vector.shape_cast %51 : vector<24x4x1x4xf32> to vector<24x4x4xf32>
    %53 = vector.extract_strided_slice %50 {offsets = [0, 0, 1, 0], sizes = [24, 4, 1, 4], strides = [1, 1, 1, 1]} : vector<24x4x2x4xf32> to vector<24x4x1x4xf32>
    %54 = vector.shape_cast %53 : vector<24x4x1x4xf32> to vector<24x4x4xf32>
    %55 = vector.extract_strided_slice %52 {offsets = [0, 1, 0], sizes = [24, 3, 4], strides = [1, 1, 1]} : vector<24x4x4xf32> to vector<24x3x4xf32>
    %cst_12 = arith.constant 0.000000e+00 : f32
    %56 = vector.broadcast %cst_12 : f32 to vector<24x1x4xf32>
    %57 = tpu.concatenate %55, %56 in 1 : vector<24x3x4xf32>, vector<24x1x4xf32> -> vector<24x4x4xf32>
    %58 = arith.addf %52, %54 : vector<24x4x4xf32>
    %59 = arith.addf %58, %57 : vector<24x4x4xf32>
    %60 = vector.shape_cast %46 : vector<4x4xf32> to vector<1x4x4xf32>
    %61 = vector.broadcast %60 : vector<1x4x4xf32> to vector<24x4x4xf32>
    %62 = arith.mulf %59, %61 : vector<24x4x4xf32>
    %63 = vector.shape_cast %62 : vector<24x4x4xf32> to vector<96x4xf32>
    %c0_13 = arith.constant 0 : index
    %c0_14 = arith.constant 0 : index
    %64 = vector.load %arg2[%c0_13, %c0_14] : memref<96x4xf32, #tpu.memory_space<vmem>>, vector<96x4xf32>
    tpu.vector_store %arg2[%c0_13, %c0_14], %63 {strides = array<i32>} : memref<96x4xf32, #tpu.memory_space<vmem>>, vector<96x4xf32>,
    return
  }
  func.func @transform_0(%arg0: i32) -> (i32, i32) {
    %c0_i32 = arith.constant 0 : i32
    %c0_i32_0 = arith.constant 0 : i32
    return %arg0, %c0_i32 : i32, i32
  }
  func.func @transform_1(%arg0: i32) -> (i32, i32) {
    %c0_i32 = arith.constant 0 : i32
    %c0_i32_0 = arith.constant 0 : i32
    return %arg0, %c0_i32 : i32, i32
  }
}

</mosaic_0001>

<bundles_post_ra>
// kernel: _tf_avg_pool3d_impl.1
= control target key start
LH: loop header
LB: loop body
LE: loop exit
PB: predicated region body
PF: predicated region fallthrough
CT: control target
= control target key end

     0   :  { %6 = vsyncpa [#allocation3], 0  ;;  %s4095_s0 = inlined_call_operand.hbm [shape: f32[192,8], index: 0, kind: input, shape index: {}]   ;;  %s4096_s1 = inlined_call_operand.hbm [shape: f32[96,4], index: 1, kind: output, shape index: {}]  }
   0x1   :  { %7 = vsyncpa [#allocation4], 0  ;;  %s3071_s6 = smov [#allocation2]   ;;  %s3023_s10 = scalar_lea.hbm %s4095_s0, 3072 }
   0x2   :  { %s13_s7 = sshll.u32 %s3071_s6, 4  ;;  %p3024_p0 = scmp.ne.s32.totalorder %s4095_s0, %s3023_s10  ;;  %s14_s7 = int_to_ptr.vmem [resolvable:$true] %s13_s7 }
   0x3   :  { %p3027_p1 = scmp.lt.u32.totalorder %s3023_s10, %s4095_s0 }
   0x5   :  { %p3029_p2 = pnand %p3027_p1, %p3024_p0 }
   0x7   :  { %3032 = shalt.err (!%p3029_p2)
}
   0x8   :  { %s3033_s15 = scalar_lea.vmem %s14_s7, 3072  ;;  %p3038_p4 = scmp.lt.s32.totalorder %s14_s7, %s14_s7 }
   0x9   :  { %p3034_p3 = scmp.ne.s32.totalorder %s14_s7, %s3033_s15  ;;  %p3039_p5 = scmp.lt.s32.totalorder %s3033_s15, %s3033_s15 }
   0xb   :  { %p3040_p6 = por %p3039_p5, %p3038_p4 }
   0xd   :  { %p3041_p7 = pnand %p3040_p6, %p3034_p3 }
   0xf   :  { %3044 = shalt.err (!%p3041_p7)
}
  0x10   :  { %s3072_s16 = smov 128   ;;  %s3073_s17 = smov 8  }
  0x11   :  { %19 = dma.hbm_to_vmem [thread:$0]  %s4095_s0, 3072, %s14_s7, [#allocation3], %s3072_s16, %s3072_s16, %s3073_s17  }
  0x12   :  { %3067 = dma.done.wait [#allocation3], 3072  }
  0x13   :  { %3068 = vsyncadd [#allocation3], 4294964224  ;;  %v23_v0 = vlaneseq  ;;  %vm80_vm0 = vcmask 64512   ;;  %v3074_v6 = vmov 0.0   ;;  %v56_v10 = vld [vmem:[#allocation2] sm:$0xff]  ;;  %v57_v32 = vld [vmem:[#allocation2 + $0x8] sm:$0xff] }
  0x14   :  { %v68_v11 = vld [vmem:[#allocation2 + $0x60] sm:$0xff]  ;;  %2973 = vmatprep.mubr.msk.f32.mxu0 %vm80_vm0, %v56_v10  ;;  %v3075_v18 = vmov 269488144   ;;  %v3076_v20 = vmov 842150450   ;;  %v69_v33 = vld [vmem:[#allocation2 + $0x68] sm:$0xff] }
  0x15   :  { %v3104_v1 = vshrl.u32 %v23_v0, 7  ;;  %v26_v2 = vand.u32 127, %v23_v0  ;;  %2991 = vmatprep.mubr.msk.f32.mxu1 %vm80_vm0, %v68_v11  ;;  %v2095_v19 = vunpack.c.l.s4 %v3075_v18  ;;  %v2102_v21 = vunpack.c.l.s4 %v3076_v20  ;;  %v58_v34 = vld [vmem:[#allocation2 + $0x10] sm:$0xff]  ;;  %v59_v36 = vld [vmem:[#allocation2 + $0x18] sm:$0xff]  ;;  %v60_v38 = vld [vmem:[#allocation2 + $0x20] sm:$0xff]  ;;  %s3078_s0 = smov [#allocation5]  }
  0x16   :  { %v70_v35 = vld [vmem:[#allocation2 + $0x70] sm:$0xff]  ;;  %v71_v37 = vld [vmem:[#allocation2 + $0x78] sm:$0xff]  ;;  %v72_v39 = vld [vmem:[#allocation2 + $0x80] sm:$0xff]  ;;  %v3077_v54 = vmov 1983009808   ;;  %vm1154_vm8 = vcmask 1041409  }
  0x17   :  { %v27_v3 = vmul.u32 2, %v26_v2  ;;  %v44_v4 = vmul.u32 2, %v3104_v1  ;;  %v2096_v22 = vunpack.c.0.s8 %v2095_v19  ;;  %v2103_v23 = vunpack.c.0.s8 %v2102_v21  ;;  %v61_v40 = vld [vmem:[#allocation2 + $0x28] sm:$0xff]  ;;  %v62_v42 = vld [vmem:[#allocation2 + $0x30] sm:$0xff]  ;;  %v63_v44 = vld [vmem:[#allocation2 + $0x38] sm:$0xff]  ;;  %s2809_s20 = sshll.u32 %s3078_s0, 4  ;;  %s2810_s20 = int_to_ptr.vmem [resolvable:$true] %s2809_s20 }
  0x18   :  { %v73_v41 = vld [vmem:[#allocation2 + $0x88] sm:$0xff]  ;;  %v74_v43 = vld [vmem:[#allocation2 + $0x90] sm:$0xff]  ;;  %v75_v45 = vld [vmem:[#allocation2 + $0x98] sm:$0xff]  ;;  %v364_v55 = vunpack.c.l.s4 %v3077_v54  ;;  %v3143_v58 = vsub.s32 0, %v3104_v1  ;;  %vm1156_vm9 = vcmask 1042434   ;;  %vm1228_vm10 = vcmask 1042432   ;;  %p3050_p9 = scmp.lt.s32.totalorder %s2810_s20, %s2810_s20 }
  0x19   :  { %v29_v5 = vadd.s32 2, %v27_v3  ;;  %vm34_vm1 = vcmp.ge.s32.totalorder %v27_v3, 0  ;;  %vm45_vm2 = vcmp.ge.s32.totalorder %v44_v4, 0  ;;  %v49_v9 = vadd.s32 2, %v44_v4  ;;  %v64_v46 = vld [vmem:[#allocation2 + $0x40] sm:$0xff]  ;;  %v65_v48 = vld [vmem:[#allocation2 + $0x48] sm:$0xff] }
  0x1a   :  { %v2822_v7 = vsel %vm34_vm1, 1.0, %v3074_v6  ;;  %v2824_v8 = vsel %vm45_vm2, 1.0, %v3074_v6  ;;  %vm28_vm5 = vcmp.ge.s32.totalorder %v3104_v1, %v27_v3  ;;  %v2099_v25 = vsub.s32 %v2096_v22, %v3104_v1  ;;  %v76_v47 = vld [vmem:[#allocation2 + $0xa0] sm:$0xff]  ;;  %v77_v49 = vld [vmem:[#allocation2 + $0xa8] sm:$0xff]  ;;  %v66_v50 = vld [vmem:[#allocation2 + $0x50] sm:$0xff]  ;;  %s3045_s21 = scalar_lea.vmem %s2810_s20, 1536 }
  0x1b   :  { %v37_v12 = vadd.f32 1.0, %v2822_v7  ;;  %vm38_vm3 = vcmp.le.s32.totalorder %v29_v5, 7  ;;  %v48_v13 = vadd.f32 1.0, %v2824_v8  ;;  %vm50_vm4 = vcmp.le.s32.totalorder %v49_v9, 7  ;;  %v78_v51 = vld [vmem:[#allocation2 + $0xb0] sm:$0xff]  ;;  %v67_v52 = vld [vmem:[#allocation2 + $0x58] sm:$0xff]  ;;  %p3046_p8 = scmp.ne.s32.totalorder %s2810_s20, %s3045_s21  ;;  %p3051_p10 = scmp.lt.s32.totalorder %s3045_s21, %s3045_s21 }
  0x1c   :  { %v2823_v14 = vsel %vm38_vm3, 1.0, %v3074_v6  ;;  %v2825_v16 = vsel %vm50_vm4, 1.0, %v3074_v6  ;;  %vm30_vm6 = vcmp.le.s32.totalorder %v3104_v1, %v29_v5  ;;  %v2106_v26 = vsub.s32 %v2103_v23, %v3104_v1  ;;  %v79_v53 = vld [vmem:[#allocation2 + $0xb8] sm:$0xff] }
  0x1d   :  { %v41_v15 = vadd.f32 %v2823_v14, %v37_v12  ;;  %v53_v17 = vadd.f32 %v2825_v16, %v48_v13  ;;  %vm31_vm7 = vmand %vm28_vm5, %vm30_vm6  ;;  %v365_v56 = vunpack.c.0.s8 %v364_v55  ;;  %vm2692_vm11 = vcmask 1043459   ;;  %p3052_p11 = por %p3051_p10, %p3050_p9 }
  0x1e   :  { %v2821_v24 = vsel %vm31_vm7, 1.0, %v3074_v6  ;;  %vm2694_vm12 = vcmask 1044484   ;;  %vm2696_vm13 = vcmask 1045509   ;;  %vm2698_vm14 = vcmask 1046534  }
  0x1f   :  { %3019 = vrcp.f32 %v41_v15  ;;  %v3140_v57 = vsub.s32 %v365_v56, %v3104_v1  ;;  %vm2700_vm15 = vcmask 1047559   ;;  %p3053_p12 = pnand %p3052_p11, %p3046_p8 }
  0x20   :  { %3021 = vrcp.f32 %v53_v17 }
  0x29   :  { %v3020_v27 = vpop.eup %3019 }
  0x2a   :  { %v3022_v28 = vpop.eup %3021  ;;  %v43_v29 = vmul.f32 %v3020_v27, %v2821_v24 }
  0x2b   :  { %v3113_v30 = vrot.slane %v3022_v28, %v2099_v25  ;;  %v3115_v31 = vrot.slane %v3022_v28, %v2106_v26 }
  0x2c   :  { %2971 = vmatprep.subr.mxu0 %v43_v29  ;;  %3009 = vmatprep.subr.mxu1 %v43_v29 }
  0x2d   :  { %2972 = vmatpush3.msra.mxu0 %v43_v29  ;;  %3010 = vmatpush3.msra.mxu1 %v43_v29  ;;  %v3146_v60 = vrot.slane %v3113_v30, 1  ;;  %v3153_v1 = vrot.slane %v3115_v31, 1 }
  0x2e   :  { %2974 = vmatmul.mubr.msk.f32.vlgmr.msra.gmra.mrb[0].mxu0 %vm80_vm0, %v57_v32  ;;  %2992 = vmatmul.mubr.msk.f32.vlgmr.msra.gmra.mrb[0].mxu1 %vm80_vm0, %v69_v33 }
  0x2f   :  { %2976 = vmatprep.mubr.msk.f32.mxu0 %vm80_vm0, %v58_v34  ;;  %2994 = vmatprep.mubr.msk.f32.mxu1 %vm80_vm0, %v70_v35 }
  0x32   :  { %2977 = vmatmul.mubr.msk.f32.gmra.mrb[2].mxu0 %vm80_vm0, %v59_v36  ;;  %2995 = vmatmul.mubr.msk.f32.gmra.mrb[2].mxu1 %vm80_vm0, %v71_v37 }
  0x33   :  { %2979 = vmatprep.mubr.msk.f32.mxu0 %vm80_vm0, %v60_v38  ;;  %2997 = vmatprep.mubr.msk.f32.mxu1 %vm80_vm0, %v72_v39 }
  0x36   :  { %2980 = vmatmul.mubr.msk.f32.gmra.mrb[4].mxu0 %vm80_vm0, %v61_v40  ;;  %2998 = vmatmul.mubr.msk.f32.gmra.mrb[4].mxu1 %vm80_vm0, %v73_v41 }
  0x37   :  { %2982 = vmatprep.mubr.msk.f32.mxu0 %vm80_vm0, %v62_v42  ;;  %3000 = vmatprep.mubr.msk.f32.mxu1 %vm80_vm0, %v74_v43 }
  0x3a   :  { %2983 = vmatmul.mubr.msk.f32.gmra.mrb[6].mxu0 %vm80_vm0, %v63_v44  ;;  %3001 = vmatmul.mubr.msk.f32.gmra.mrb[6].mxu1 %vm80_vm0, %v75_v45 }
  0x3b   :  { %2985 = vmatprep.mubr.msk.f32.mxu0 %vm80_vm0, %v64_v46  ;;  %3003 = vmatprep.mubr.msk.f32.mxu1 %vm80_vm0, %v76_v47 }
  0x3e   :  { %2986 = vmatmul.mubr.msk.f32.gmra.mrb[8].mxu0 %vm80_vm0, %v65_v48  ;;  %3004 = vmatmul.mubr.msk.f32.gmra.mrb[8].mxu1 %vm80_vm0, %v77_v49 }
  0x3f   :  { %2988 = vmatprep.mubr.msk.f32.mxu0 %vm80_vm0, %v66_v50  ;;  %3006 = vmatprep.mubr.msk.f32.mxu1 %vm80_vm0, %v78_v51 }
  0x42   :  { %2989 = vmatmul.mubr.msk.f32.gmra.mrb[10].mxu0 %vm80_vm0, %v67_v52  ;;  %3007 = vmatmul.mubr.msk.f32.gmra.mrb[10].mxu1 %vm80_vm0, %v79_v53  ;;  %vm2791_vm0 = vcmask 31744  }
 0x101   :  { %v2975_v59 = vpop.f32.mrb[0].mxu0  ;;  %v2993_v61 = vpop.f32.mrb[0].mxu1 }
 0x102   :  { %v379_v62 = vcombine.high %v2975_v59, %v2975_v59  ;;  %v386_v63 = vrot.slane %v2975_v59, %v3140_v57  ;;  %v583_v0 = vcombine.high %v2993_v61, %v2993_v61  ;;  %v590_v2 = vrot.slane %v2993_v61, %v3140_v57  ;;  %v219_v3 = vpop.f32.mrb[1].mxu0  ;;  %v3150_v4 = vpop.f32.mrb[1].mxu1 }
 0x103   :  { %v362_v5 = vcombine.high %v219_v3, %v219_v3  ;;  %v3156_v6 = vrot.slane %v219_v3, %v3140_v57  ;;  %v566_v7 = vcombine.high %v3150_v4, %v3150_v4  ;;  %v3167_v15 = vrot.slane %v3150_v4, %v3140_v57 }
 0x104   :  { %v393_v8 = vrot.slane %v379_v62, %v3140_v57  ;;  %v394_v9 = vcombine.high %v386_v63, %v386_v63  ;;  %v2854_v10 = vrot.slane %v386_v63, 9  ;;  %v597_v11 = vrot.slane %v583_v0, %v3140_v57 }
 0x105   :  { %v598_v12 = vcombine.high %v590_v2, %v590_v2  ;;  %v2902_v13 = vrot.slane %v590_v2, 9  ;;  %v3163_v14 = vrot.slane %v362_v5, %v3140_v57  ;;  %v3169_v16 = vpop.f32.mrb[2].mxu0  ;;  %v3171_v17 = vpop.f32.mrb[2].mxu1  ;;  %v3182_v27 = vcombine.high %v3156_v6, %v3156_v6 }
 0x106   :  { %v395_v18 = vcombine.high %v393_v8, %v393_v8  ;;  %v881_v19 = vrot.slane %v394_v9, %v3143_v58  ;;  %v885_v20 = vrot.slane %v393_v8, %v3143_v58  ;;  %v2855_v21 = vrot.slane %v394_v9, 9  ;;  %v3175_v22 = vpop.f32.mrb[3].mxu0  ;;  %v3177_v23 = vpop.f32.mrb[3].mxu1 }
 0x107   :  { %v2856_v24 = vrot.slane %v393_v8, 9  ;;  %v599_v25 = vcombine.high %v597_v11, %v597_v11  ;;  %v1025_v26 = vrot.slane %v598_v12, %v3143_v58  ;;  %v1545_v33 = vadd.f32 %v2854_v10, %v386_v63 }
 0x108   :  { %v889_v28 = vrot.slane %v395_v18, %v3143_v58  ;;  %v1158_v29 = vsel %vm1154_vm8, %v885_v20, %v881_v19  ;;  %v2857_v32 = vrot.slane %v395_v18, 9  ;;  %v1546_v34 = vadd.f32 %v2855_v21, %v394_v9 }
 0x109   :  { %v1029_v35 = vrot.slane %v597_v11, %v3143_v58  ;;  %v1033_v36 = vrot.slane %v599_v25, %v3143_v58  ;;  %v2903_v37 = vrot.slane %v598_v12, 9  ;;  %v3188_v38 = vpop.f32.mrb[4].mxu0  ;;  %v3190_v39 = vpop.f32.mrb[4].mxu1  ;;  %v1547_v41 = vadd.f32 %v2856_v24, %v393_v8 }
 0x10a   :  { %v1159_v40 = vsel %vm1156_vm9, %v889_v28, %v1158_v29  ;;  %v1548_v42 = vadd.f32 %v2857_v32, %v395_v18  ;;  %v2904_v43 = vrot.slane %v597_v11, 9  ;;  %v3193_v44 = vpop.f32.mrb[5].mxu0  ;;  %v3195_v45 = vpop.f32.mrb[5].mxu1  ;;  %v2905_v48 = vrot.slane %v599_v25, 9 }
 0x10b   :  { %v1230_v46 = vsel %vm1228_vm10, %v1159_v40, 0.0  ;;  %v1182_v47 = vsel %vm1154_vm8, %v1029_v35, %v1025_v26  ;;  %v1593_v49 = vadd.f32 %v2902_v13, %v590_v2  ;;  %v1594_v52 = vadd.f32 %v2903_v37, %v598_v12 }
 0x10c   :  { %v1675_v50 = vrot.slane %v1230_v46, %v3140_v57  ;;  %v1183_v51 = vsel %vm1156_vm9, %v1033_v36, %v1182_v47  ;;  %v1595_v53 = vadd.f32 %v2904_v43, %v597_v11  ;;  %v378_v55 = vcombine.high %v3163_v14, %v3163_v14 }
 0x10d   :  { %v1242_v54 = vsel %vm1228_vm10, %v1183_v51, 0.0  ;;  %v869_v56 = vrot.slane %v3182_v27, %v3143_v58  ;;  %v873_v59 = vrot.slane %v3163_v14, %v3143_v58  ;;  %v3208_v61 = vpop.f32.mrb[6].mxu0  ;;  %v3210_v62 = vpop.f32.mrb[6].mxu1  ;;  %v1596_v9 = vadd.f32 %v2905_v48, %v599_v25 }
 0x10e   :  { %v1676_v63 = vcombine.high %v1675_v50, %v1675_v50  ;;  %v1855_v0 = vrot.slane %v1675_v50, 1  ;;  %v2001_v2 = vadd.f32 %v1675_v50, %v1545_v33  ;;  %v1771_v3 = vrot.slane %v1242_v54, %v3140_v57  ;;  %v3213_v5 = vpop.f32.mrb[7].mxu0  ;;  %v3215_v8 = vpop.f32.mrb[7].mxu1 }
 0x10f   :  { %v877_v10 = vrot.slane %v378_v55, %v3143_v58  ;;  %v1155_v11 = vsel %vm1154_vm8, %v873_v59, %v869_v56  ;;  %v2850_v12 = vrot.slane %v3156_v6, 9  ;;  %v2851_v28 = vrot.slane %v3182_v27, 9 }
 0x110   :  { %v1856_v13 = vrot.slane %v1676_v63, 1  ;;  %v2002_v18 = vadd.f32 %v1855_v0, %v1546_v34  ;;  %v2003_v19 = vadd.f32 %v1676_v63, %v1547_v41  ;;  %v3221_v20 = vmul.f32 %v3113_v30, %v2001_v2 }
 0x111   :  { %v1772_v21 = vcombine.high %v1771_v3, %v1771_v3  ;;  %v1879_v24 = vrot.slane %v1771_v3, 1  ;;  %v2049_v26 = vadd.f32 %v1771_v3, %v1593_v49  ;;  %v3224_v29 = vpop.f32.mrb[8].mxu0  ;;  %v1157_v34 = vsel %vm1156_vm9, %v877_v10, %v1155_v11 }
 0x112   :  { %v2004_v25 = vadd.f32 %v1856_v13, %v1548_v42  ;;  %v3227_v32 = vmul.f32 %v3146_v60, %v2002_v18  ;;  %v3230_v33 = vmul.f32 %v3115_v31, %v2003_v19  ;;  %v2325_v42 = vrot.slane %v3221_v20, %v3143_v58 }
 0x113   :  { %v1880_v35 = vrot.slane %v1772_v21, 1  ;;  %v2050_v36 = vadd.f32 %v1879_v24, %v1594_v52  ;;  %v2051_v37 = vadd.f32 %v1772_v21, %v1595_v53  ;;  %v3234_v40 = vmul.f32 %v3113_v30, %v2049_v26 }
 0x114   :  { %v3237_v41 = vmul.f32 %v3153_v1, %v2004_v25  ;;  %v2329_v43 = vrot.slane %v3227_v32, %v3143_v58  ;;  %v2333_v46 = vrot.slane %v3230_v33, %v3143_v58  ;;  %v1229_v50 = vsel %vm1228_vm10, %v1157_v34, 0.0 }
 0x115   :  { %v2052_v47 = vadd.f32 %v1880_v35, %v1596_v9  ;;  %v3246_v48 = vmul.f32 %v3146_v60, %v2050_v36  ;;  %v3249_v49 = vmul.f32 %v3115_v31, %v2051_v37  ;;  %v2517_v52 = vrot.slane %v3234_v40, %v3143_v58 }
 0x116   :  { %v2337_v51 = vrot.slane %v3237_v41, %v3143_v58  ;;  %v2852_v53 = vrot.slane %v3163_v14, 9  ;;  %v2853_v54 = vrot.slane %v378_v55, 9  ;;  %v1541_v0 = vadd.f32 %v2850_v12, %v3156_v6 }
 0x117   :  { %v3258_v56 = vmul.f32 %v3153_v1, %v2052_v47  ;;  %v2521_v59 = vrot.slane %v3246_v48, %v3143_v58  ;;  %v2525_v63 = vrot.slane %v3249_v49, %v3143_v58  ;;  %v1542_v2 = vadd.f32 %v2851_v28, %v3182_v27  ;;  %v3277_v27 = vpop.f32.mrb[8].mxu1 }
 0x118   :  { %v1543_v3 = vadd.f32 %v2852_v53, %v3163_v14  ;;  %v1667_v9 = vrot.slane %v1229_v50, %v3140_v57  ;;  %v580_v10 = vrot.slane %v566_v7, %v3140_v57  ;;  %v1544_v13 = vadd.f32 %v2853_v54, %v378_v55 }
 0x119   :  { %v2529_v11 = vrot.slane %v3258_v56, %v3143_v58  ;;  %v581_v18 = vcombine.high %v3167_v15, %v3167_v15  ;;  %v2898_v6 = vrot.slane %v3167_v15, 9  ;;  %v413_v47 = vcombine.high %v3169_v16, %v3169_v16 }
 0x11a   :  { %v1668_v14 = vcombine.high %v1667_v9, %v1667_v9  ;;  %v1853_v12 = vrot.slane %v1667_v9, 1  ;;  %v1997_v19 = vadd.f32 %v1667_v9, %v1541_v0  ;;  %v582_v21 = vcombine.high %v580_v10, %v580_v10 }
 0x11b   :  { %v1013_v4 = vrot.slane %v581_v18, %v3143_v58  ;;  %v1017_v7 = vrot.slane %v580_v10, %v3143_v58  ;;  %v2899_v24 = vrot.slane %v581_v18, 9  ;;  %v2900_v55 = vrot.slane %v580_v10, 9 }
 0x11c   :  { %v1854_v26 = vrot.slane %v1668_v14, 1  ;;  %v1998_v28 = vadd.f32 %v1853_v12, %v1542_v2  ;;  %v1999_v25 = vadd.f32 %v1668_v14, %v1543_v3  ;;  %v2114_v34 = vmul.f32 %v3113_v30, %v1997_v19 }
 0x11d   :  { %v1021_v35 = vrot.slane %v582_v21, %v3143_v58  ;;  %v1180_v36 = vsel %vm1154_vm8, %v1017_v7, %v1013_v4  ;;  %v2901_v37 = vrot.slane %v582_v21, 9  ;;  %v1589_v0 = vadd.f32 %v2898_v6, %v3167_v15 }
 0x11e   :  { %v2000_v50 = vadd.f32 %v1854_v26, %v1544_v13  ;;  %v2115_v53 = vmul.f32 %v3146_v60, %v1998_v28  ;;  %v2116_v54 = vmul.f32 %v3115_v31, %v1999_v25  ;;  %v2309_v2 = vrot.slane %v2114_v34, %v3143_v58 }
 0x11f   :  { %v1181_v3 = vsel %vm1156_vm9, %v1021_v35, %v1180_v36  ;;  %v1590_v9 = vadd.f32 %v2899_v24, %v581_v18  ;;  %v1591_v14 = vadd.f32 %v2900_v55, %v580_v10  ;;  %v1592_v7 = vadd.f32 %v2901_v37, %v582_v21 }
 0x120   :  { %v2117_v12 = vmul.f32 %v3153_v1, %v2000_v50  ;;  %v2313_v19 = vrot.slane %v2115_v53, %v3143_v58  ;;  %v2317_v4 = vrot.slane %v2116_v54, %v3143_v58  ;;  %v1241_v13 = vsel %vm1228_vm10, %v1181_v3, 0.0 }
 0x121   :  { %v1763_v26 = vrot.slane %v1241_v13, %v3140_v57  ;;  %v420_v15 = vrot.slane %v3169_v16, %v3140_v57  ;;  %v427_v6 = vrot.slane %v413_v47, %v3140_v57  ;;  %v617_v18 = vcombine.high %v3171_v17, %v3171_v17  ;;  %v3310_v47 = vpop.f32.mrb[9].mxu0 }
 0x122   :  { %v2321_v28 = vrot.slane %v2117_v12, %v3143_v58  ;;  %v2690_v10 = vsel %vm1154_vm8, %v2313_v19, %v2309_v2  ;;  %v3305_v24 = vrot.slane %v3171_v17, %v3140_v57 }
 0x123   :  { %v2691_v21 = vsel %vm1156_vm9, %v2317_v4, %v2690_v10  ;;  %v1764_v55 = vcombine.high %v1763_v26, %v1763_v26  ;;  %v1877_v25 = vrot.slane %v1763_v26, 1  ;;  %v2045_v34 = vadd.f32 %v1763_v26, %v1589_v0  ;;  %v3340_v26 = vpop.f32.mrb[9].mxu1 }
 0x124   :  { %v2693_v16 = vsel %vm2692_vm11, %v2321_v28, %v2691_v21  ;;  %v428_v35 = vcombine.high %v420_v15, %v420_v15  ;;  %v429_v36 = vcombine.high %v427_v6, %v427_v6  ;;  %v909_v37 = vrot.slane %v427_v6, %v3143_v58 }
 0x125   :  { %v2695_v50 = vsel %vm2694_vm12, %v2325_v42, %v2693_v16  ;;  %v1878_v17 = vrot.slane %v1764_v55, 1  ;;  %v2046_v53 = vadd.f32 %v1877_v25, %v1590_v9  ;;  %v2047_v54 = vadd.f32 %v1764_v55, %v1591_v14 }
 0x126   :  { %v2697_v0 = vsel %vm2696_vm13, %v2329_v43, %v2695_v50  ;;  %v2162_v2 = vmul.f32 %v3113_v30, %v2045_v34  ;;  %v905_v3 = vrot.slane %v428_v35, %v3143_v58  ;;  %v913_v12 = vrot.slane %v429_v36, %v3143_v58 }
 0x127   :  { %v2699_v20 = vsel %vm2698_vm14, %v2333_v46, %v2697_v0  ;;  %v2048_v42 = vadd.f32 %v1878_v17, %v1592_v7  ;;  %v2163_v9 = vmul.f32 %v3146_v60, %v2046_v53  ;;  %v2164_v14 = vmul.f32 %v3115_v31, %v2047_v54 }
 0x128   :  { %v2701_v32 = vsel %vm2700_vm15, %v2337_v51, %v2699_v20  ;;  %v2501_v43 = vrot.slane %v2162_v2, %v3143_v58  ;;  %v1162_v19 = vsel %vm1154_vm8, %v909_v37, %v905_v3  ;;  %v2862_v4 = vrot.slane %v420_v15, 9 }
 0x129   :  { %2792 = vst.msk [vmem:[#allocation5] sm:$0xff] %vm2791_vm0, %v2701_v32  ;;  %v2165_v33 = vmul.f32 %v3153_v1, %v2048_v42  ;;  %v2505_v46 = vrot.slane %v2163_v9, %v3143_v58  ;;  %v2509_v13 = vrot.slane %v2164_v14, %v3143_v58  ;;  %v1163_v7 = vsel %vm1156_vm9, %v913_v12, %v1162_v19 }
 0x12a   :  { %v1232_v41 = vsel %vm1228_vm10, %v1163_v7, 0.0  ;;  %v2863_v51 = vrot.slane %v428_v35, 9  ;;  %v2864_v28 = vrot.slane %v427_v6, 9  ;;  %v2865_v10 = vrot.slane %v429_v36, 9 }
 0x12b   :  { %v2513_v21 = vrot.slane %v2165_v33, %v3143_v58  ;;  %v2737_v55 = vsel %vm1154_vm8, %v2505_v46, %v2501_v43  ;;  %v1553_v25 = vadd.f32 %v2862_v4, %v420_v15  ;;  %v1691_v34 = vrot.slane %v1232_v41, %v3140_v57 }
 0x12c   :  { %v2738_v16 = vsel %vm1156_vm9, %v2509_v13, %v2737_v55  ;;  %v1554_v37 = vadd.f32 %v2863_v51, %v428_v35  ;;  %v1555_v50 = vadd.f32 %v2864_v28, %v427_v6  ;;  %v1556_v17 = vadd.f32 %v2865_v10, %v429_v36 }
 0x12d   :  { %v2739_v53 = vsel %vm2692_vm11, %v2513_v21, %v2738_v16  ;;  %v1692_v54 = vcombine.high %v1691_v34, %v1691_v34  ;;  %v1859_v0 = vrot.slane %v1691_v34, 1  ;;  %v2009_v2 = vadd.f32 %v1691_v34, %v1553_v25 }
 0x12e   :  { %v2740_v3 = vsel %vm2694_vm12, %v2517_v52, %v2739_v53  ;;  %v631_v12 = vrot.slane %v617_v18, %v3140_v57  ;;  %v632_v15 = vcombine.high %v3305_v24, %v3305_v24  ;;  %v2910_v20 = vrot.slane %v3305_v24, 9 }
 0x12f   :  { %v2741_v6 = vsel %vm2696_vm13, %v2521_v59, %v2740_v3  ;;  %v1860_v35 = vrot.slane %v1692_v54, 1  ;;  %v2010_v36 = vadd.f32 %v1859_v0, %v1554_v37  ;;  %v2011_v42 = vadd.f32 %v1692_v54, %v1555_v50 }
 0x130   :  { %v2742_v40 = vsel %vm2698_vm14, %v2525_v63, %v2741_v6  ;;  %v3365_v52 = vmul.f32 %v3113_v30, %v2009_v2  ;;  %v633_v18 = vcombine.high %v631_v12, %v631_v12  ;;  %v1049_v9 = vrot.slane %v632_v15, %v3143_v58  ;;  %v3407_v2 = vpop.f32.mrb[10].mxu0 }
 0x131   :  { %v2743_v48 = vsel %vm2700_vm15, %v2529_v11, %v2742_v40  ;;  %v2012_v59 = vadd.f32 %v1860_v35, %v1556_v17  ;;  %v3373_v14 = vmul.f32 %v3146_v60, %v2010_v36  ;;  %v3376_v32 = vmul.f32 %v3115_v31, %v2011_v42 }
 0x132   :  { %2798 = vst.msk [vmem:[#allocation5 + $0x30] sm:$0xff] %vm2791_vm0, %v2743_v48  ;;  %v1053_v49 = vrot.slane %v631_v12, %v3143_v58  ;;  %v1057_v63 = vrot.slane %v633_v18, %v3143_v58  ;;  %v2911_v43 = vrot.slane %v632_v15, 9  ;;  %v396_v19 = vcombine.high %v3175_v22, %v3175_v22 }
 0x133   :  { %v3384_v56 = vmul.f32 %v3153_v1, %v2012_v59  ;;  %v2357_v11 = vrot.slane %v3365_v52, %v3143_v58  ;;  %v2361_v4 = vrot.slane %v3373_v14, %v3143_v58  ;;  %v2912_v33 = vrot.slane %v631_v12, 9 }
 0x134   :  { %v2365_v46 = vrot.slane %v3376_v32, %v3143_v58  ;;  %v1186_v13 = vsel %vm1154_vm8, %v1053_v49, %v1049_v9  ;;  %v2913_v7 = vrot.slane %v633_v18, 9  ;;  %v1601_v41 = vadd.f32 %v2910_v20, %v3305_v24 }
 0x135   :  { %v2369_v51 = vrot.slane %v3384_v56, %v3143_v58  ;;  %v1187_v28 = vsel %vm1156_vm9, %v1057_v63, %v1186_v13  ;;  %v1602_v10 = vadd.f32 %v2911_v43, %v632_v15  ;;  %v403_v21 = vrot.slane %v3175_v22, %v3140_v57 }
 0x136   :  { %v1244_v55 = vsel %vm1228_vm10, %v1187_v28, 0.0  ;;  %v1603_v25 = vadd.f32 %v2912_v33, %v631_v12  ;;  %v410_v34 = vrot.slane %v396_v19, %v3140_v57  ;;  %v600_v16 = vcombine.high %v3177_v23, %v3177_v23 }
 0x137   :  { %v1604_v37 = vadd.f32 %v2913_v7, %v633_v18  ;;  %v1787_v24 = vrot.slane %v1244_v55, %v3140_v57  ;;  %v411_v50 = vcombine.high %v403_v21, %v403_v21  ;;  %v2858_v17 = vrot.slane %v403_v21, 9  ;;  %v3422_v7 = vpop.f32.mrb[10].mxu1 }
 0x138   :  { %v412_v53 = vcombine.high %v410_v34, %v410_v34  ;;  %v897_v54 = vrot.slane %v410_v34, %v3143_v58  ;;  %v2860_v0 = vrot.slane %v410_v34, 9  ;;  %v607_v22 = vrot.slane %v3177_v23, %v3140_v57 }
 0x139   :  { %v1788_v3 = vcombine.high %v1787_v24, %v1787_v24  ;;  %v1883_v12 = vrot.slane %v1787_v24, 1  ;;  %v2057_v15 = vadd.f32 %v1787_v24, %v1601_v41  ;;  %v893_v20 = vrot.slane %v411_v50, %v3143_v58 }
 0x13a   :  { %v901_v6 = vrot.slane %v412_v53, %v3143_v58  ;;  %v2859_v35 = vrot.slane %v411_v50, 9  ;;  %v2861_v36 = vrot.slane %v412_v53, 9  ;;  %v614_v42 = vrot.slane %v600_v16, %v3140_v57 }
 0x13b   :  { %v1884_v40 = vrot.slane %v1788_v3, 1  ;;  %v2058_v18 = vadd.f32 %v1883_v12, %v1602_v10  ;;  %v2059_v9 = vadd.f32 %v1788_v3, %v1603_v25  ;;  %v3413_v48 = vmul.f32 %v3113_v30, %v2057_v15 }
 0x13c   :  { %v1160_v23 = vsel %vm1154_vm8, %v897_v54, %v893_v20  ;;  %v1549_v59 = vadd.f32 %v2858_v17, %v403_v21  ;;  %v1550_v49 = vadd.f32 %v2859_v35, %v411_v50  ;;  %v1551_v63 = vadd.f32 %v2860_v0, %v410_v34 }
 0x13d   :  { %v2060_v43 = vadd.f32 %v1884_v40, %v1604_v37  ;;  %v3417_v19 = vmul.f32 %v3146_v60, %v2058_v18  ;;  %v3420_v33 = vmul.f32 %v3115_v31, %v2059_v9  ;;  %v1552_v13 = vadd.f32 %v2861_v36, %v412_v53 }
 0x13e   :  { %v1161_v41 = vsel %vm1156_vm9, %v901_v6, %v1160_v23  ;;  %v615_v28 = vcombine.high %v607_v22, %v607_v22  ;;  %v616_v10 = vcombine.high %v614_v42, %v614_v42  ;;  %v1041_v55 = vrot.slane %v614_v42, %v3143_v58 }
 0x13f   :  { %v3427_v21 = vmul.f32 %v3153_v1, %v2060_v43  ;;  %v2549_v25 = vrot.slane %v3413_v48, %v3143_v58  ;;  %v1231_v16 = vsel %vm1228_vm10, %v1161_v41, 0.0  ;;  %v2906_v17 = vrot.slane %v607_v22, 9 }
 0x140   :  { %v1683_v37 = vrot.slane %v1231_v16, %v3140_v57  ;;  %v1037_v24 = vrot.slane %v615_v28, %v3143_v58  ;;  %v1045_v50 = vrot.slane %v616_v10, %v3143_v58  ;;  %v2907_v54 = vrot.slane %v615_v28, 9 }
 0x141   :  { %v2908_v0 = vrot.slane %v614_v42, 9  ;;  %v2909_v3 = vrot.slane %v616_v10, 9  ;;  %v1597_v36 = vadd.f32 %v2906_v17, %v607_v22  ;;  %v447_v34 = vcombine.high %v3188_v38, %v3188_v38 }
 0x142   :  { %v1684_v12 = vcombine.high %v1683_v37, %v1683_v37  ;;  %v1857_v15 = vrot.slane %v1683_v37, 1  ;;  %v2005_v20 = vadd.f32 %v1683_v37, %v1549_v59  ;;  %v1184_v6 = vsel %vm1154_vm8, %v1041_v55, %v1037_v24 }
 0x143   :  { %v1185_v35 = vsel %vm1156_vm9, %v1045_v50, %v1184_v6  ;;  %v1598_v40 = vadd.f32 %v2907_v54, %v615_v28  ;;  %v1599_v18 = vadd.f32 %v2908_v0, %v614_v42  ;;  %v1600_v53 = vadd.f32 %v2909_v3, %v616_v10  ;;  %v3461_v6 = vpop.f32.mrb[11].mxu0 }
 0x144   :  { %v1858_v9 = vrot.slane %v1684_v12, 1  ;;  %v2006_v23 = vadd.f32 %v1857_v15, %v1550_v49  ;;  %v2007_v43 = vadd.f32 %v1684_v12, %v1551_v63  ;;  %v2122_v41 = vmul.f32 %v3113_v30, %v2005_v20 }
 0x145   :  { %v1243_v16 = vsel %vm1228_vm10, %v1185_v35, 0.0  ;;  %v454_v59 = vrot.slane %v3188_v38, %v3140_v57  ;;  %v461_v63 = vrot.slane %v447_v34, %v3140_v57  ;;  %v651_v38 = vcombine.high %v3190_v39, %v3190_v39 }
 0x146   :  { %v2008_v55 = vadd.f32 %v1858_v9, %v1552_v13  ;;  %v2123_v37 = vmul.f32 %v3146_v60, %v2006_v23  ;;  %v2124_v22 = vmul.f32 %v3115_v31, %v2007_v43  ;;  %v2341_v42 = vrot.slane %v2122_v41, %v3143_v58 }
 0x147   :  { %v1779_v49 = vrot.slane %v1243_v16, %v3140_v57  ;;  %v462_v28 = vcombine.high %v454_v59, %v454_v59  ;;  %v2870_v24 = vrot.slane %v454_v59, 9  ;;  %v463_v3 = vcombine.high %v461_v63, %v461_v63 }
 0x148   :  { %v2125_v10 = vmul.f32 %v3153_v1, %v2008_v55  ;;  %v2345_v50 = vrot.slane %v2123_v37, %v3143_v58  ;;  %v2349_v17 = vrot.slane %v2124_v22, %v3143_v58  ;;  %v933_v20 = vrot.slane %v461_v63, %v3143_v58 }
 0x149   :  { %v1780_v13 = vcombine.high %v1779_v49, %v1779_v49  ;;  %v1881_v54 = vrot.slane %v1779_v49, 1  ;;  %v2053_v0 = vadd.f32 %v1779_v49, %v1597_v36  ;;  %v929_v34 = vrot.slane %v462_v28, %v3143_v58 }
 0x14a   :  { %v2353_v12 = vrot.slane %v2125_v10, %v3143_v58  ;;  %v2702_v15 = vsel %vm1154_vm8, %v2345_v50, %v2341_v42  ;;  %v937_v16 = vrot.slane %v463_v3, %v3143_v58  ;;  %v2871_v50 = vrot.slane %v462_v28, 9 }
 0x14b   :  { %v2703_v35 = vsel %vm1156_vm9, %v2349_v17, %v2702_v15  ;;  %v1882_v9 = vrot.slane %v1780_v13, 1  ;;  %v2054_v23 = vadd.f32 %v1881_v54, %v1598_v40  ;;  %v2055_v43 = vadd.f32 %v1780_v13, %v1599_v18 }
 0x14c   :  { %v2704_v41 = vsel %vm2692_vm11, %v2353_v12, %v2703_v35  ;;  %v2170_v36 = vmul.f32 %v3113_v30, %v2053_v0  ;;  %v1166_v55 = vsel %vm1154_vm8, %v933_v20, %v929_v34  ;;  %v2872_v13 = vrot.slane %v461_v63, 9  ;;  %v3492_v0 = vpop.f32.mrb[11].mxu1 }
 0x14d   :  { %v2705_v37 = vsel %vm2694_vm12, %v2357_v11, %v2704_v41  ;;  %v2056_v22 = vadd.f32 %v1882_v9, %v1600_v53  ;;  %v2171_v42 = vmul.f32 %v3146_v60, %v2054_v23  ;;  %v2172_v49 = vmul.f32 %v3115_v31, %v2055_v43 }
 0x14e   :  { %v2706_v40 = vsel %vm2696_vm13, %v2361_v4, %v2705_v37  ;;  %v2533_v18 = vrot.slane %v2170_v36, %v3143_v58  ;;  %v1167_v10 = vsel %vm1156_vm9, %v937_v16, %v1166_v55  ;;  %v2873_v54 = vrot.slane %v463_v3, 9 }
 0x14f   :  { %v2707_v52 = vsel %vm2698_vm14, %v2365_v46, %v2706_v40  ;;  %v2173_v11 = vmul.f32 %v3153_v1, %v2056_v22  ;;  %v2537_v53 = vrot.slane %v2171_v42, %v3143_v58  ;;  %v2541_v17 = vrot.slane %v2172_v49, %v3143_v58 }
 0x150   :  { %v2708_v14 = vsel %vm2700_vm15, %v2369_v51, %v2707_v52  ;;  %v1234_v4 = vsel %vm1228_vm10, %v1167_v10, 0.0  ;;  %v2561_v32 = vrot.slane %v3427_v21, %v3143_v58  ;;  %v1561_v15 = vadd.f32 %v2870_v24, %v454_v59 }
 0x151   :  { %2793 = vst.msk [vmem:[#allocation5 + $0x8] sm:$0xff] %vm2791_vm0, %v2708_v14  ;;  %v2545_v46 = vrot.slane %v2173_v11, %v3143_v58  ;;  %v2744_v12 = vsel %vm1154_vm8, %v2537_v53, %v2533_v18  ;;  %v1562_v34 = vadd.f32 %v2871_v50, %v462_v28  ;;  %v1563_v51 = vadd.f32 %v2872_v13, %v461_v63 }
 0x152   :  { %v2745_v56 = vsel %vm1156_vm9, %v2541_v17, %v2744_v12  ;;  %v1707_v20 = vrot.slane %v1234_v4, %v3140_v57  ;;  %v1564_v9 = vadd.f32 %v2873_v54, %v463_v3  ;;  %v658_v23 = vrot.slane %v3190_v39, %v3140_v57 }
 0x153   :  { %v2746_v35 = vsel %vm2692_vm11, %v2545_v46, %v2745_v56  ;;  %v665_v21 = vrot.slane %v651_v38, %v3140_v57  ;;  %v4097_v63 = vrot.slane %v3417_v19, %v3143_v58  ;;  %v4098_v39 = vrot.slane %v3420_v33, %v3143_v58 }
 0x154   :  { %v2747_v43 = vsel %vm2694_vm12, %v2549_v25, %v2746_v35  ;;  %v1708_v59 = vcombine.high %v1707_v20, %v1707_v20  ;;  %v1863_v24 = vrot.slane %v1707_v20, 1  ;;  %v2017_v41 = vadd.f32 %v1707_v20, %v1561_v15 }
 0x155   :  { %v2748_v28 = vsel %vm2696_vm13, %v4097_v63, %v2747_v43  ;;  %v666_v36 = vcombine.high %v658_v23, %v658_v23  ;;  %v667_v3 = vcombine.high %v665_v21, %v665_v21  ;;  %v1077_v16 = vrot.slane %v665_v21, %v3143_v58 }
 0x156   :  { %v2749_v38 = vsel %vm2698_vm14, %v4098_v39, %v2748_v28  ;;  %v1864_v48 = vrot.slane %v1708_v59, 1  ;;  %v2018_v55 = vadd.f32 %v1863_v24, %v1562_v34  ;;  %v2019_v25 = vadd.f32 %v1708_v59, %v1563_v51 }
 0x157   :  { %v2750_v37 = vsel %vm2700_vm15, %v2561_v32, %v2749_v38  ;;  %v3520_v22 = vmul.f32 %v3113_v30, %v2017_v41  ;;  %v1073_v19 = vrot.slane %v666_v36, %v3143_v58  ;;  %v1081_v42 = vrot.slane %v667_v3, %v3143_v58 }
 0x158   :  { %2799 = vst.msk [vmem:[#allocation5 + $0x38] sm:$0xff] %vm2791_vm0, %v2750_v37  ;;  %v2020_v49 = vadd.f32 %v1864_v48, %v1564_v9  ;;  %v3526_v40 = vmul.f32 %v3146_v60, %v2018_v55  ;;  %v3529_v33 = vmul.f32 %v3115_v31, %v2019_v25  ;;  %v2918_v18 = vrot.slane %v658_v23, 9 }
 0x159   :  { %v1190_v10 = vsel %vm1154_vm8, %v1077_v16, %v1073_v19  ;;  %v2919_v50 = vrot.slane %v666_v36, 9  ;;  %v2920_v52 = vrot.slane %v665_v21, 9  ;;  %v430_v11 = vcombine.high %v3193_v44, %v3193_v44 }
 0x15a   :  { %v3535_v53 = vmul.f32 %v3153_v1, %v2020_v49  ;;  %v2389_v17 = vrot.slane %v3520_v22, %v3143_v58  ;;  %v1191_v14 = vsel %vm1156_vm9, %v1081_v42, %v1190_v10  ;;  %v2393_v4 = vrot.slane %v3526_v40, %v3143_v58 }
 0x15b   :  { %v2397_v13 = vrot.slane %v3529_v33, %v3143_v58  ;;  %v1246_v54 = vsel %vm1228_vm10, %v1191_v14, 0.0  ;;  %v2921_v32 = vrot.slane %v667_v3, 9  ;;  %v1609_v46 = vadd.f32 %v2918_v18, %v658_v23 }
 0x15c   :  { %v1610_v12 = vadd.f32 %v2919_v50, %v666_v36  ;;  %v1803_v15 = vrot.slane %v1246_v54, %v3140_v57  ;;  %v437_v56 = vrot.slane %v3193_v44, %v3140_v57  ;;  %v1611_v34 = vadd.f32 %v2920_v52, %v665_v21 }
 0x15d   :  { %v1612_v51 = vadd.f32 %v2921_v32, %v667_v3  ;;  %v444_v20 = vrot.slane %v430_v11, %v3140_v57  ;;  %v634_v35 = vcombine.high %v3195_v45, %v3195_v45  ;;  %v641_v48 = vrot.slane %v3195_v45, %v3140_v57 }
 0x15e   :  { %v1804_v9 = vcombine.high %v1803_v15, %v1803_v15  ;;  %v1887_v43 = vrot.slane %v1803_v15, 1  ;;  %v2065_v59 = vadd.f32 %v1803_v15, %v1609_v46  ;;  %v445_v24 = vcombine.high %v437_v56, %v437_v56 }
 0x15f   :  { %v446_v41 = vcombine.high %v444_v20, %v444_v20  ;;  %v921_v23 = vrot.slane %v444_v20, %v3143_v58  ;;  %v2866_v63 = vrot.slane %v437_v56, 9  ;;  %v2868_v28 = vrot.slane %v444_v20, 9 }
 0x160   :  { %v1888_v36 = vrot.slane %v1804_v9, 1  ;;  %v2066_v16 = vadd.f32 %v1887_v43, %v1610_v12  ;;  %v2067_v39 = vadd.f32 %v1804_v9, %v1611_v34  ;;  %v3553_v44 = vmul.f32 %v3113_v30, %v2065_v59 }
 0x161   :  { %v917_v21 = vrot.slane %v445_v24, %v3143_v58  ;;  %v925_v3 = vrot.slane %v446_v41, %v3143_v58  ;;  %v2867_v38 = vrot.slane %v445_v24, 9  ;;  %v2401_v55 = vrot.slane %v3535_v53, %v3143_v58 }
 0x162   :  { %v2068_v25 = vadd.f32 %v1888_v36, %v1612_v51  ;;  %v3562_v37 = vmul.f32 %v3146_v60, %v2066_v16  ;;  %v2869_v19 = vrot.slane %v446_v41, 9  ;;  %v3565_v42 = vmul.f32 %v3115_v31, %v2067_v39 }
 0x163   :  { %v2581_v49 = vrot.slane %v3553_v44, %v3143_v58  ;;  %v1164_v18 = vsel %vm1154_vm8, %v921_v23, %v917_v21  ;;  %v1557_v10 = vadd.f32 %v2866_v63, %v437_v56  ;;  %v1558_v52 = vadd.f32 %v2867_v38, %v445_v24 }
 0x164   :  { %v3571_v50 = vmul.f32 %v3153_v1, %v2068_v25  ;;  %v1165_v45 = vsel %vm1156_vm9, %v925_v3, %v1164_v18  ;;  %v1559_v11 = vadd.f32 %v2868_v28, %v444_v20  ;;  %v2585_v14 = vrot.slane %v3562_v37, %v3143_v58 }
 0x165   :  { %v1233_v54 = vsel %vm1228_vm10, %v1165_v45, 0.0  ;;  %v648_v32 = vrot.slane %v634_v35, %v3140_v57  ;;  %v649_v46 = vcombine.high %v641_v48, %v641_v48  ;;  %v1560_v12 = vadd.f32 %v2869_v19, %v446_v41 }
 0x166   :  { %v1699_v15 = vrot.slane %v1233_v54, %v3140_v57  ;;  %v2914_v34 = vrot.slane %v641_v48, 9  ;;  %v481_v56 = vcombine.high %v3208_v61, %v3208_v61  ;;  %v2589_v33 = vrot.slane %v3565_v42, %v3143_v58 }
 0x167   :  { %v650_v51 = vcombine.high %v648_v32, %v648_v32  ;;  %v1061_v9 = vrot.slane %v649_v46, %v3143_v58  ;;  %v1065_v20 = vrot.slane %v648_v32, %v3143_v58  ;;  %v2915_v43 = vrot.slane %v649_v46, 9 }
 0x168   :  { %v1700_v59 = vcombine.high %v1699_v15, %v1699_v15  ;;  %v1861_v24 = vrot.slane %v1699_v15, 1  ;;  %v2013_v23 = vadd.f32 %v1699_v15, %v1557_v10  ;;  %v2916_v63 = vrot.slane %v648_v32, 9 }
 0x169   :  { %v1069_v35 = vrot.slane %v650_v51, %v3143_v58  ;;  %v1188_v41 = vsel %vm1154_vm8, %v1065_v20, %v1061_v9  ;;  %v2917_v28 = vrot.slane %v650_v51, 9  ;;  %v1605_v36 = vadd.f32 %v2914_v34, %v641_v48 }
 0x16a   :  { %v1862_v16 = vrot.slane %v1700_v59, 1  ;;  %v2014_v39 = vadd.f32 %v1861_v24, %v1558_v52  ;;  %v2015_v21 = vadd.f32 %v1700_v59, %v1559_v11  ;;  %v2130_v3 = vmul.f32 %v3113_v30, %v2013_v23 }
 0x16b   :  { %v1189_v38 = vsel %vm1156_vm9, %v1069_v35, %v1188_v41  ;;  %v1606_v25 = vadd.f32 %v2915_v43, %v649_v46  ;;  %v1607_v19 = vadd.f32 %v2916_v63, %v648_v32  ;;  %v1608_v18 = vadd.f32 %v2917_v28, %v650_v51 }
 0x16c   :  { %v2016_v45 = vadd.f32 %v1862_v16, %v1560_v12  ;;  %v2131_v10 = vmul.f32 %v3146_v60, %v2014_v39  ;;  %v2132_v54 = vmul.f32 %v3115_v31, %v2015_v21  ;;  %v2373_v15 = vrot.slane %v2130_v3, %v3143_v58 }
 0x16d   :  { %v1245_v9 = vsel %vm1228_vm10, %v1189_v38, 0.0  ;;  %v488_v48 = vrot.slane %v3208_v61, %v3140_v57  ;;  %v495_v52 = vrot.slane %v481_v56, %v3140_v57  ;;  %v685_v11 = vcombine.high %v3210_v62, %v3210_v62 }
 0x16e   :  { %v2133_v32 = vmul.f32 %v3153_v1, %v2016_v45  ;;  %v2377_v46 = vrot.slane %v2131_v10, %v3143_v58  ;;  %v2381_v12 = vrot.slane %v2132_v54, %v3143_v58  ;;  %v1795_v34 = vrot.slane %v1245_v9, %v3140_v57 }
 0x16f   :  { %v496_v51 = vcombine.high %v488_v48, %v488_v48  ;;  %v497_v20 = vcombine.high %v495_v52, %v495_v52  ;;  %v957_v43 = vrot.slane %v495_v52, %v3143_v58  ;;  %v2878_v59 = vrot.slane %v488_v48, 9 }
 0x170   :  { %v2385_v61 = vrot.slane %v2133_v32, %v3143_v58  ;;  %v2709_v56 = vsel %vm1154_vm8, %v2377_v46, %v2373_v15  ;;  %v1796_v24 = vcombine.high %v1795_v34, %v1795_v34  ;;  %v1885_v23 = vrot.slane %v1795_v34, 1 }
 0x171   :  { %v2710_v63 = vsel %vm1156_vm9, %v2381_v12, %v2709_v56  ;;  %v2061_v35 = vadd.f32 %v1795_v34, %v1605_v36  ;;  %v953_v41 = vrot.slane %v496_v51, %v3143_v58  ;;  %v961_v28 = vrot.slane %v497_v20, %v3143_v58 }
 0x172   :  { %v2711_v16 = vsel %vm2692_vm11, %v2385_v61, %v2710_v63  ;;  %v1886_v39 = vrot.slane %v1796_v24, 1  ;;  %v2062_v21 = vadd.f32 %v1885_v23, %v1606_v25  ;;  %v2063_v3 = vadd.f32 %v1796_v24, %v1607_v19 }
 0x173   :  { %v2712_v38 = vsel %vm2694_vm12, %v2389_v17, %v2711_v16  ;;  %v2178_v45 = vmul.f32 %v3113_v30, %v2061_v35  ;;  %v1170_v10 = vsel %vm1154_vm8, %v957_v43, %v953_v41  ;;  %v2879_v54 = vrot.slane %v496_v51, 9 }
 0x174   :  { %v2713_v36 = vsel %vm2696_vm13, %v2393_v4, %v2712_v38  ;;  %v2064_v15 = vadd.f32 %v1886_v39, %v1608_v18  ;;  %v2179_v9 = vmul.f32 %v3146_v60, %v2062_v21  ;;  %v2180_v25 = vmul.f32 %v3115_v31, %v2063_v3 }
 0x175   :  { %v2714_v22 = vsel %vm2698_vm14, %v2397_v13, %v2713_v36  ;;  %v2565_v17 = vrot.slane %v2178_v45, %v3143_v58  ;;  %v1171_v19 = vsel %vm1156_vm9, %v961_v28, %v1170_v10  ;;  %v2880_v32 = vrot.slane %v495_v52, 9 }
 0x176   :  { %v2715_v40 = vsel %vm2700_vm15, %v2401_v55, %v2714_v22  ;;  %v2181_v4 = vmul.f32 %v3153_v1, %v2064_v15  ;;  %v2569_v18 = vrot.slane %v2179_v9, %v3143_v58  ;;  %v2573_v46 = vrot.slane %v2180_v25, %v3143_v58 }
 0x177   :  { %v2593_v13 = vrot.slane %v3571_v50, %v3143_v58  ;;  %2794 = vst.msk [vmem:[#allocation5 + $0x10] sm:$0xff] %vm2791_vm0, %v2715_v40  ;;  %v1236_v12 = vsel %vm1228_vm10, %v1171_v19, 0.0  ;;  %v2881_v34 = vrot.slane %v497_v20, 9  ;;  %v1569_v43 = vadd.f32 %v2878_v59, %v488_v48 }
 0x178   :  { %v2577_v53 = vrot.slane %v2181_v4, %v3143_v58  ;;  %v2751_v55 = vsel %vm1154_vm8, %v2569_v18, %v2565_v17  ;;  %v1723_v61 = vrot.slane %v1236_v12, %v3140_v57  ;;  %v1570_v24 = vadd.f32 %v2879_v54, %v496_v51 }
 0x179   :  { %v2752_v56 = vsel %vm1156_vm9, %v2573_v46, %v2751_v55  ;;  %v692_v42 = vrot.slane %v3210_v62, %v3140_v57  ;;  %v699_v50 = vrot.slane %v685_v11, %v3140_v57  ;;  %v1571_v63 = vadd.f32 %v2880_v32, %v495_v52 }
 0x17a   :  { %v2753_v23 = vsel %vm2692_vm11, %v2577_v53, %v2752_v56  ;;  %v1724_v35 = vcombine.high %v1723_v61, %v1723_v61  ;;  %v1867_v41 = vrot.slane %v1723_v61, 1  ;;  %v2025_v51 = vadd.f32 %v1723_v61, %v1569_v43 }
 0x17b   :  { %v2754_v48 = vsel %vm2694_vm12, %v2581_v49, %v2753_v23  ;;  %v700_v59 = vcombine.high %v692_v42, %v692_v42  ;;  %v701_v28 = vcombine.high %v699_v50, %v699_v50  ;;  %v1101_v16 = vrot.slane %v699_v50, %v3143_v58 }
 0x17c   :  { %v2755_v62 = vsel %vm2696_vm13, %v2585_v14, %v2754_v48  ;;  %v1868_v11 = vrot.slane %v1724_v35, 1  ;;  %v2026_v39 = vadd.f32 %v1867_v41, %v1570_v24  ;;  %v2027_v21 = vadd.f32 %v1724_v35, %v1571_v63 }
 0x17d   :  { %v2756_v52 = vsel %vm2698_vm14, %v2589_v33, %v2755_v62  ;;  %v1097_v3 = vrot.slane %v700_v59, %v3143_v58  ;;  %v1105_v44 = vrot.slane %v701_v28, %v3143_v58  ;;  %v1572_v38 = vadd.f32 %v2881_v34, %v497_v20 }
 0x17e   :  { %v2757_v49 = vsel %vm2700_vm15, %v2593_v13, %v2756_v52  ;;  %v2926_v37 = vrot.slane %v692_v42, 9  ;;  %v2927_v10 = vrot.slane %v700_v59, 9  ;;  %v3662_v54 = vmul.f32 %v3113_v30, %v2025_v51 }
 0x17f   :  { %2800 = vst.msk [vmem:[#allocation5 + $0x40] sm:$0xff] %vm2791_vm0, %v2757_v49  ;;  %v1194_v45 = vsel %vm1154_vm8, %v1101_v16, %v1097_v3  ;;  %v2028_v14 = vadd.f32 %v1868_v11, %v1572_v38  ;;  %v3666_v15 = vmul.f32 %v3146_v60, %v2026_v39  ;;  %v3669_v9 = vmul.f32 %v3115_v31, %v2027_v21 }
 0x180   :  { %v1195_v36 = vsel %vm1156_vm9, %v1105_v44, %v1194_v45  ;;  %v2928_v25 = vrot.slane %v699_v50, 9  ;;  %v2929_v22 = vrot.slane %v701_v28, 9  ;;  %v1617_v17 = vadd.f32 %v2926_v37, %v692_v42 }
 0x181   :  { %v1248_v20 = vsel %vm1228_vm10, %v1195_v36, 0.0  ;;  %v464_v32 = vcombine.high %v3213_v5, %v3213_v5  ;;  %v1618_v40 = vadd.f32 %v2927_v10, %v700_v59  ;;  %v471_v18 = vrot.slane %v3213_v5, %v3140_v57 }
 0x182   :  { %v1819_v19 = vrot.slane %v1248_v20, %v3140_v57  ;;  %v1619_v4 = vadd.f32 %v2928_v25, %v699_v50  ;;  %v668_v46 = vcombine.high %v3215_v8, %v3215_v8  ;;  %v3681_v53 = vmul.f32 %v3153_v1, %v2028_v14 }
 0x183   :  { %v478_v34 = vrot.slane %v464_v32, %v3140_v57  ;;  %v2421_v55 = vrot.slane %v3662_v54, %v3143_v58  ;;  %v2425_v43 = vrot.slane %v3666_v15, %v3143_v58  ;;  %v479_v61 = vcombine.high %v471_v18, %v471_v18 }
 0x184   :  { %v1820_v33 = vcombine.high %v1819_v19, %v1819_v19  ;;  %v1891_v13 = vrot.slane %v1819_v19, 1  ;;  %v2073_v12 = vadd.f32 %v1819_v19, %v1617_v17  ;;  %v1620_v56 = vadd.f32 %v2929_v22, %v701_v28 }
 0x185   :  { %v480_v23 = vcombine.high %v478_v34, %v478_v34  ;;  %v941_v63 = vrot.slane %v479_v61, %v3143_v58  ;;  %v945_v35 = vrot.slane %v478_v34, %v3143_v58  ;;  %v2874_v48 = vrot.slane %v471_v18, 9 }
 0x186   :  { %v1892_v5 = vrot.slane %v1820_v33, 1  ;;  %v2074_v24 = vadd.f32 %v1891_v13, %v1618_v40  ;;  %v2075_v42 = vadd.f32 %v1820_v33, %v1619_v4  ;;  %v3688_v50 = vmul.f32 %v3113_v30, %v2073_v12 }
 0x187   :  { %v675_v59 = vrot.slane %v3215_v8, %v3140_v57  ;;  %v682_v16 = vrot.slane %v668_v46, %v3140_v57  ;;  %v2429_v28 = vrot.slane %v3669_v9, %v3143_v58  ;;  %v949_v62 = vrot.slane %v480_v23, %v3143_v58 }
 0x188   :  { %v2076_v41 = vadd.f32 %v1892_v5, %v1620_v56  ;;  %v1168_v11 = vsel %vm1154_vm8, %v945_v35, %v941_v63  ;;  %v2875_v51 = vrot.slane %v479_v61, 9  ;;  %v2433_v39 = vrot.slane %v3681_v53, %v3143_v58 }
 0x189   :  { %v3702_v52 = vmul.f32 %v3146_v60, %v2074_v24  ;;  %v3705_v21 = vmul.f32 %v3115_v31, %v2075_v42  ;;  %v2876_v8 = vrot.slane %v478_v34, 9  ;;  %v2613_v44 = vrot.slane %v3688_v50, %v3143_v58 }
 0x18a   :  { %v3708_v3 = vmul.f32 %v3153_v1, %v2076_v41  ;;  %v1169_v49 = vsel %vm1156_vm9, %v949_v62, %v1168_v11  ;;  %v2877_v38 = vrot.slane %v480_v23, 9  ;;  %v1565_v37 = vadd.f32 %v2874_v48, %v471_v18 }
 0x18b   :  { %v1235_v45 = vsel %vm1228_vm10, %v1169_v49, 0.0  ;;  %v683_v10 = vcombine.high %v675_v59, %v675_v59  ;;  %v684_v14 = vcombine.high %v682_v16, %v682_v16  ;;  %v1566_v36 = vadd.f32 %v2875_v51, %v479_v61 }
 0x18c   :  { %v1715_v20 = vrot.slane %v1235_v45, %v3140_v57  ;;  %v1089_v25 = vrot.slane %v682_v16, %v3143_v58  ;;  %v2922_v22 = vrot.slane %v675_v59, 9  ;;  %v1567_v17 = vadd.f32 %v2876_v8, %v478_v34 }
 0x18d   :  { %v1085_v19 = vrot.slane %v683_v10, %v3143_v58  ;;  %v1093_v32 = vrot.slane %v684_v14, %v3143_v58  ;;  %v2923_v40 = vrot.slane %v683_v10, 9  ;;  %v2924_v13 = vrot.slane %v682_v16, 9 }
 0x18e   :  { %v1716_v4 = vcombine.high %v1715_v20, %v1715_v20  ;;  %v1865_v46 = vrot.slane %v1715_v20, 1  ;;  %v2021_v33 = vadd.f32 %v1715_v20, %v1565_v37  ;;  %v1568_v12 = vadd.f32 %v2877_v38, %v480_v23 }
 0x18f   :  { %v1192_v18 = vsel %vm1154_vm8, %v1089_v25, %v1085_v19  ;;  %v2925_v56 = vrot.slane %v684_v14, 9  ;;  %v1613_v61 = vadd.f32 %v2922_v22, %v675_v59  ;;  %v1614_v35 = vadd.f32 %v2923_v40, %v683_v10 }
 0x190   :  { %v1866_v5 = vrot.slane %v1716_v4, 1  ;;  %v2022_v24 = vadd.f32 %v1865_v46, %v1566_v36  ;;  %v2023_v42 = vadd.f32 %v1716_v4, %v1567_v17  ;;  %v2138_v63 = vmul.f32 %v3113_v30, %v2021_v33 }
 0x191   :  { %v1193_v34 = vsel %vm1156_vm9, %v1093_v32, %v1192_v18  ;;  %v515_v41 = vcombine.high %v3224_v29, %v3224_v29  ;;  %v522_v48 = vrot.slane %v3224_v29, %v3140_v57  ;;  %v1615_v59 = vadd.f32 %v2924_v13, %v682_v16 }
 0x192   :  { %v2024_v62 = vadd.f32 %v1866_v5, %v1568_v12  ;;  %v2139_v23 = vmul.f32 %v3146_v60, %v2022_v24  ;;  %v2140_v11 = vmul.f32 %v3115_v31, %v2023_v42  ;;  %v2405_v51 = vrot.slane %v2138_v63, %v3143_v58 }
 0x193   :  { %v1247_v8 = vsel %vm1228_vm10, %v1193_v34, 0.0  ;;  %v3730_v49 = vrot.slane %v515_v41, %v3140_v57  ;;  %v530_v38 = vcombine.high %v522_v48, %v522_v48  ;;  %v1616_v36 = vadd.f32 %v2925_v56, %v684_v14 }
 0x194   :  { %v2141_v45 = vmul.f32 %v3153_v1, %v2024_v62  ;;  %v2409_v37 = vrot.slane %v2139_v23, %v3143_v58  ;;  %v2413_v29 = vrot.slane %v2140_v11, %v3143_v58  ;;  %v1811_v10 = vrot.slane %v1247_v8, %v3140_v57 }
 0x195   :  { %v531_v16 = vcombine.high %v3730_v49, %v3730_v49  ;;  %v977_v20 = vrot.slane %v530_v38, %v3143_v58  ;;  %v981_v25 = vrot.slane %v3730_v49, %v3143_v58  ;;  %v2886_v42 = vrot.slane %v522_v48, 9 }
 0x196   :  { %v2417_v22 = vrot.slane %v2141_v45, %v3143_v58  ;;  %v2716_v17 = vsel %vm1154_vm8, %v2409_v37, %v2405_v51  ;;  %v1812_v19 = vcombine.high %v1811_v10, %v1811_v10  ;;  %v1889_v32 = vrot.slane %v1811_v10, 1 }
 0x197   :  { %v2717_v40 = vsel %vm1156_vm9, %v2413_v29, %v2716_v17  ;;  %v2069_v4 = vadd.f32 %v1811_v10, %v1613_v61  ;;  %v985_v46 = vrot.slane %v531_v16, %v3143_v58  ;;  %v1174_v14 = vsel %vm1154_vm8, %v981_v25, %v977_v20 }
 0x198   :  { %v2718_v33 = vsel %vm2692_vm11, %v2417_v22, %v2717_v40  ;;  %v1890_v13 = vrot.slane %v1812_v19, 1  ;;  %v2070_v12 = vadd.f32 %v1889_v32, %v1614_v35  ;;  %v2071_v18 = vadd.f32 %v1812_v19, %v1615_v59 }
 0x199   :  { %v2719_v56 = vsel %vm2694_vm12, %v2421_v55, %v2718_v33  ;;  %v2186_v5 = vmul.f32 %v3113_v30, %v2069_v4  ;;  %v1175_v24 = vsel %vm1156_vm9, %v985_v46, %v1174_v14  ;;  %v719_v62 = vcombine.high %v3277_v27, %v3277_v27 }
 0x19a   :  { %v2720_v61 = vsel %vm2696_vm13, %v2425_v43, %v2719_v56  ;;  %v2072_v63 = vadd.f32 %v1890_v13, %v1616_v36  ;;  %v2187_v34 = vmul.f32 %v3146_v60, %v2070_v12  ;;  %v2188_v35 = vmul.f32 %v3115_v31, %v2071_v18 }
 0x19b   :  { %v2721_v54 = vsel %vm2698_vm14, %v2429_v28, %v2720_v61  ;;  %v2597_v55 = vrot.slane %v2186_v5, %v3143_v58  ;;  %v1238_v41 = vsel %vm1228_vm10, %v1175_v24, 0.0  ;;  %v2617_v28 = vrot.slane %v3702_v52, %v3143_v58 }
 0x19c   :  { %v2722_v15 = vsel %vm2700_vm15, %v2433_v39, %v2721_v54  ;;  %v2189_v43 = vmul.f32 %v3153_v1, %v2072_v63  ;;  %v2601_v23 = vrot.slane %v2187_v34, %v3143_v58  ;;  %v2605_v9 = vrot.slane %v2188_v35, %v3143_v58 }
 0x19d   :  { %v2621_v11 = vrot.slane %v3705_v21, %v3143_v58  ;;  %2795 = vst.msk [vmem:[#allocation5 + $0x18] sm:$0xff] %vm2791_vm0, %v2722_v15  ;;  %v2887_v59 = vrot.slane %v530_v38, 9  ;;  %v1577_v51 = vadd.f32 %v2886_v42, %v522_v48  ;;  %v1739_v8 = vrot.slane %v1238_v41, %v3140_v57 }
 0x19e   :  { %v2609_v53 = vrot.slane %v2189_v43, %v3143_v58  ;;  %v2758_v39 = vsel %vm1154_vm8, %v2601_v23, %v2597_v55  ;;  %v726_v45 = vrot.slane %v3277_v27, %v3140_v57  ;;  %v2888_v52 = vrot.slane %v3730_v49, 9 }
 0x19f   :  { %v2759_v37 = vsel %vm1156_vm9, %v2605_v9, %v2758_v39  ;;  %v2889_v29 = vrot.slane %v531_v16, 9  ;;  %v733_v21 = vrot.slane %v719_v62, %v3140_v57  ;;  %v1740_v36 = vcombine.high %v1739_v8, %v1739_v8 }
 0x1a0   :  { %v2760_v10 = vsel %vm2692_vm11, %v2609_v53, %v2759_v37  ;;  %v1871_v48 = vrot.slane %v1739_v8, 1  ;;  %v2033_v20 = vadd.f32 %v1739_v8, %v1577_v51  ;;  %v734_v22 = vcombine.high %v726_v45, %v726_v45 }
 0x1a1   :  { %v2761_v25 = vsel %vm2694_vm12, %v2613_v44, %v2760_v10  ;;  %v735_v17 = vcombine.high %v733_v21, %v733_v21  ;;  %v1125_v27 = vrot.slane %v733_v21, %v3143_v58  ;;  %v2625_v19 = vrot.slane %v3708_v3, %v3143_v58 }
 0x1a2   :  { %v2762_v32 = vsel %vm2696_vm13, %v2617_v28, %v2761_v25  ;;  %v1578_v40 = vadd.f32 %v2887_v59, %v530_v38  ;;  %v1872_v4 = vrot.slane %v1740_v36, 1  ;;  %v1579_v14 = vadd.f32 %v2888_v52, %v3730_v49 }
 0x1a3   :  { %v2763_v46 = vsel %vm2698_vm14, %v2621_v11, %v2762_v32  ;;  %v1121_v33 = vrot.slane %v734_v22, %v3143_v58  ;;  %v1129_v50 = vrot.slane %v735_v17, %v3143_v58  ;;  %v1580_v13 = vadd.f32 %v2889_v29, %v531_v16 }
 0x1a4   :  { %v2764_v44 = vsel %vm2700_vm15, %v2625_v19, %v2763_v46  ;;  %v2034_v12 = vadd.f32 %v1871_v48, %v1578_v40  ;;  %v498_v18 = vcombine.high %v3310_v47, %v3310_v47  ;;  %v2035_v3 = vadd.f32 %v1740_v36, %v1579_v14 }
 0x1a5   :  { %2801 = vst.msk [vmem:[#allocation5 + $0x48] sm:$0xff] %vm2791_vm0, %v2764_v44  ;;  %v3805_v38 = vmul.f32 %v3113_v30, %v2033_v20  ;;  %v1198_v56 = vsel %vm1154_vm8, %v1125_v27, %v1121_v33  ;;  %v505_v49 = vrot.slane %v3310_v47, %v3140_v57  ;;  %v2036_v5 = vadd.f32 %v1872_v4, %v1580_v13 }
 0x1a6   :  { %v1199_v24 = vsel %vm1156_vm9, %v1129_v50, %v1198_v56  ;;  %v2934_v42 = vrot.slane %v726_v45, 9  ;;  %v3813_v61 = vmul.f32 %v3146_v60, %v2034_v12  ;;  %v2935_v63 = vrot.slane %v734_v22, 9 }
 0x1a7   :  { %v1250_v16 = vsel %vm1228_vm10, %v1199_v24, 0.0  ;;  %v512_v35 = vrot.slane %v498_v18, %v3140_v57  ;;  %v3818_v54 = vmul.f32 %v3115_v31, %v2035_v3  ;;  %v2453_v47 = vrot.slane %v3805_v38, %v3143_v58 }
 0x1a8   :  { %v1835_v34 = vrot.slane %v1250_v16, %v3140_v57  ;;  %v2936_v55 = vrot.slane %v733_v21, 9  ;;  %v513_v41 = vcombine.high %v505_v49, %v505_v49  ;;  %v3823_v62 = vmul.f32 %v3153_v1, %v2036_v5 }
 0x1a9   :  { %v1625_v15 = vadd.f32 %v2934_v42, %v726_v45  ;;  %v514_v23 = vcombine.high %v512_v35, %v512_v35  ;;  %v2937_v9 = vrot.slane %v735_v17, 9  ;;  %v969_v59 = vrot.slane %v512_v35, %v3143_v58 }
 0x1aa   :  { %v1836_v43 = vcombine.high %v1835_v34, %v1835_v34  ;;  %v1895_v28 = vrot.slane %v1835_v34, 1  ;;  %v965_v11 = vrot.slane %v513_v41, %v3143_v58  ;;  %v2457_v51 = vrot.slane %v3813_v61, %v3143_v58 }
 0x1ab   :  { %v1626_v53 = vadd.f32 %v2935_v63, %v734_v22  ;;  %v2081_v39 = vadd.f32 %v1835_v34, %v1625_v15  ;;  %v2882_v8 = vrot.slane %v505_v49, 9  ;;  %v1627_v37 = vadd.f32 %v2936_v55, %v733_v21 }
 0x1ac   :  { %v1896_v52 = vrot.slane %v1836_v43, 1  ;;  %v973_v29 = vrot.slane %v514_v23, %v3143_v58  ;;  %v1172_v45 = vsel %vm1154_vm8, %v969_v59, %v965_v11  ;;  %v2461_v10 = vrot.slane %v3818_v54, %v3143_v58 }
 0x1ad   :  { %v2465_v36 = vrot.slane %v3823_v62, %v3143_v58  ;;  %v2883_v48 = vrot.slane %v513_v41, 9  ;;  %v2884_v20 = vrot.slane %v512_v35, 9  ;;  %v1628_v25 = vadd.f32 %v2937_v9, %v735_v17 }
 0x1ae   :  { %v2082_v27 = vadd.f32 %v1895_v28, %v1626_v53  ;;  %v2083_v19 = vadd.f32 %v1836_v43, %v1627_v37  ;;  %v1173_v22 = vsel %vm1156_vm9, %v973_v29, %v1172_v45  ;;  %v3837_v21 = vmul.f32 %v3113_v30, %v2081_v39 }
 0x1af   :  { %v1237_v32 = vsel %vm1228_vm10, %v1173_v22, 0.0  ;;  %v2885_v40 = vrot.slane %v514_v23, 9  ;;  %v1573_v4 = vadd.f32 %v2882_v8, %v505_v49  ;;  %v3840_v46 = vadd.f32 %v1896_v52, %v1628_v25 }
 0x1b0   :  { %v1731_v14 = vrot.slane %v1237_v32, %v3140_v57  ;;  %v702_v33 = vcombine.high %v3340_v26, %v3340_v26  ;;  %v709_v17 = vrot.slane %v3340_v26, %v3140_v57  ;;  %v1574_v50 = vadd.f32 %v2883_v48, %v513_v41 }
 0x1b1   :  { %v1575_v44 = vadd.f32 %v2884_v20, %v512_v35  ;;  %v549_v13 = vcombine.high %v3407_v2, %v3407_v2  ;;  %v3851_v12 = vrot.slane %v3407_v2, %v3140_v57  ;;  %v3855_v5 = vmul.f32 %v3146_v60, %v2082_v27 }
 0x1b2   :  { %v1732_v18 = vcombine.high %v1731_v14, %v1731_v14  ;;  %v1869_v3 = vrot.slane %v1731_v14, 1  ;;  %v2029_v56 = vadd.f32 %v1731_v14, %v1573_v4  ;;  %v716_v49 = vrot.slane %v702_v33, %v3140_v57 }
 0x1b3   :  { %v1576_v24 = vadd.f32 %v2885_v40, %v514_v23  ;;  %v717_v42 = vcombine.high %v709_v17, %v709_v17  ;;  %v2930_v26 = vrot.slane %v709_v17, 9  ;;  %v3861_v15 = vrot.slane %v549_v13, %v3140_v57 }
 0x1b4   :  { %v1870_v16 = vrot.slane %v1732_v18, 1  ;;  %v2030_v63 = vadd.f32 %v1869_v3, %v1574_v50  ;;  %v2031_v34 = vadd.f32 %v1732_v18, %v1575_v44  ;;  %v2146_v35 = vmul.f32 %v3113_v30, %v2029_v56 }
 0x1b5   :  { %v718_v55 = vcombine.high %v716_v49, %v716_v49  ;;  %v1109_v2 = vrot.slane %v717_v42, %v3143_v58  ;;  %v1113_v41 = vrot.slane %v716_v49, %v3143_v58  ;;  %v3867_v28 = vcombine.high %v3851_v12, %v3851_v12 }
 0x1b6   :  { %v2032_v43 = vadd.f32 %v1870_v16, %v1576_v24  ;;  %v2147_v9 = vmul.f32 %v3146_v60, %v2030_v63  ;;  %v2148_v23 = vmul.f32 %v3115_v31, %v2031_v34  ;;  %v2437_v11 = vrot.slane %v2146_v35, %v3143_v58 }
 0x1b7   :  { %v1117_v59 = vrot.slane %v718_v55, %v3143_v58  ;;  %v1196_v53 = vsel %vm1154_vm8, %v1113_v41, %v1109_v2  ;;  %v2931_v39 = vrot.slane %v717_v42, 9  ;;  %v2932_v29 = vrot.slane %v716_v49, 9 }
 0x1b8   :  { %v2149_v8 = vmul.f32 %v3153_v1, %v2032_v43  ;;  %v2441_v37 = vrot.slane %v2147_v9, %v3143_v58  ;;  %v2445_v52 = vrot.slane %v2148_v23, %v3143_v58  ;;  %v3876_v45 = vmul.f32 %v3115_v31, %v2083_v19 }
 0x1b9   :  { %v1197_v48 = vsel %vm1156_vm9, %v1117_v59, %v1196_v53  ;;  %v2933_v20 = vrot.slane %v718_v55, 9  ;;  %v1621_v25 = vadd.f32 %v2930_v26, %v709_v17  ;;  %v3884_v40 = vcombine.high %v3861_v15, %v3861_v15 }
 0x1ba   :  { %v2449_v27 = vrot.slane %v2149_v8, %v3143_v58  ;;  %v2723_v22 = vsel %vm1154_vm8, %v2441_v37, %v2437_v11  ;;  %v1249_v32 = vsel %vm1228_vm10, %v1197_v48, 0.0  ;;  %v1001_v19 = vrot.slane %v3867_v28, %v3143_v58 }
 0x1bb   :  { %v2724_v4 = vsel %vm1156_vm9, %v2445_v52, %v2723_v22  ;;  %v1827_v14 = vrot.slane %v1249_v32, %v3140_v57  ;;  %v1005_v33 = vrot.slane %v3861_v15, %v3143_v58  ;;  %v1622_v50 = vadd.f32 %v2931_v39, %v717_v42 }
 0x1bc   :  { %v2725_v17 = vsel %vm2692_vm11, %v2449_v27, %v2724_v4  ;;  %v1623_v44 = vadd.f32 %v2932_v29, %v716_v49  ;;  %v1009_v13 = vrot.slane %v3884_v40, %v3143_v58  ;;  %v1624_v16 = vadd.f32 %v2933_v20, %v718_v55 }
 0x1bd   :  { %v2726_v18 = vsel %vm2694_vm12, %v2453_v47, %v2725_v17  ;;  %v1828_v3 = vcombine.high %v1827_v14, %v1827_v14  ;;  %v1893_v56 = vrot.slane %v1827_v14, 1  ;;  %v2077_v24 = vadd.f32 %v1827_v14, %v1621_v25 }
 0x1be   :  { %v2727_v26 = vsel %vm2696_vm13, %v2457_v51, %v2726_v18  ;;  %v1178_v42 = vsel %vm1154_vm8, %v1005_v33, %v1001_v19  ;;  %v753_v49 = vcombine.high %v3422_v7, %v3422_v7  ;;  %v3918_v55 = vrot.slane %v3422_v7, %v3140_v57 }
 0x1bf   :  { %v2728_v38 = vsel %vm2698_vm14, %v2461_v10, %v2727_v26  ;;  %v1894_v47 = vrot.slane %v1828_v3, 1  ;;  %v2078_v63 = vadd.f32 %v1893_v56, %v1622_v50  ;;  %v2079_v34 = vadd.f32 %v1828_v3, %v1623_v44 }
 0x1c0   :  { %v2729_v61 = vsel %vm2700_vm15, %v2465_v36, %v2728_v38  ;;  %v2194_v51 = vmul.f32 %v3113_v30, %v2077_v24  ;;  %v1179_v35 = vsel %vm1156_vm9, %v1009_v13, %v1178_v42  ;;  %v2894_v36 = vrot.slane %v3851_v12, 9 }
 0x1c1   :  { %2796 = vst.msk [vmem:[#allocation5 + $0x20] sm:$0xff] %vm2791_vm0, %v2729_v61  ;;  %v2080_v54 = vadd.f32 %v1894_v47, %v1624_v16  ;;  %v2195_v10 = vmul.f32 %v3146_v60, %v2078_v63  ;;  %v2196_v2 = vmul.f32 %v3115_v31, %v2079_v34  ;;  %v1240_v41 = vsel %vm1228_vm10, %v1179_v35, 0.0 }
 0x1c2   :  { %v2629_v62 = vrot.slane %v2194_v51, %v3143_v58  ;;  %v1755_v23 = vrot.slane %v1240_v41, %v3140_v57  ;;  %v2201_v11 = vmul.f32 %v3153_v1, %v3840_v46  ;;  %v2645_v59 = vrot.slane %v3837_v21, %v3143_v58 }
 0x1c3   :  { %v2197_v43 = vmul.f32 %v3153_v1, %v2080_v54  ;;  %v2633_v9 = vrot.slane %v2195_v10, %v3143_v58  ;;  %v2637_v7 = vrot.slane %v2196_v2, %v3143_v58  ;;  %v3935_v53 = vrot.slane %v753_v49, %v3140_v57 }
 0x1c4   :  { %v3939_v39 = vcombine.high %v3918_v55, %v3918_v55  ;;  %v2649_v8 = vrot.slane %v3855_v5, %v3143_v58  ;;  %v2653_v37 = vrot.slane %v3876_v45, %v3143_v58  ;;  %v2895_v21 = vrot.slane %v3867_v28, 9 }
 0x1c5   :  { %v2641_v52 = vrot.slane %v2197_v43, %v3143_v58  ;;  %v2765_v46 = vsel %vm1154_vm8, %v2633_v9, %v2629_v62  ;;  %v2896_v48 = vrot.slane %v3861_v15, 9  ;;  %v1756_v20 = vcombine.high %v1755_v23, %v1755_v23 }
 0x1c6   :  { %v2766_v29 = vsel %vm1156_vm9, %v2637_v7, %v2765_v46  ;;  %v2897_v27 = vrot.slane %v3884_v40, 9  ;;  %v1585_v5 = vadd.f32 %v2894_v36, %v3851_v12  ;;  %v3955_v45 = vcombine.high %v3935_v53, %v3935_v53 }
 0x1c7   :  { %v2767_v25 = vsel %vm2692_vm11, %v2641_v52, %v2766_v29  ;;  %v1875_v32 = vrot.slane %v1755_v23, 1  ;;  %v1145_v4 = vrot.slane %v3939_v39, %v3143_v58  ;;  %v1149_v14 = vrot.slane %v3935_v53, %v3143_v58 }
 0x1c8   :  { %v2768_v22 = vsel %vm2694_vm12, %v2645_v59, %v2767_v25  ;;  %v2657_v19 = vrot.slane %v2201_v11, %v3143_v58  ;;  %v2041_v17 = vadd.f32 %v1755_v23, %v1585_v5  ;;  %v1586_v50 = vadd.f32 %v2895_v21, %v3867_v28 }
 0x1c9   :  { %v2769_v33 = vsel %vm2696_vm13, %v2649_v8, %v2768_v22  ;;  %v1876_v44 = vrot.slane %v1756_v20, 1  ;;  %v532_v13 = vcombine.high %v3461_v6, %v3461_v6  ;;  %v1587_v3 = vadd.f32 %v2896_v48, %v3861_v15 }
 0x1ca   :  { %v2770_v12 = vsel %vm2698_vm14, %v2653_v37, %v2769_v33  ;;  %v1153_v56 = vrot.slane %v3955_v45, %v3143_v58  ;;  %v1588_v24 = vadd.f32 %v2897_v27, %v3884_v40  ;;  %v2042_v26 = vadd.f32 %v1875_v32, %v1586_v50 }
 0x1cb   :  { %v2771_v18 = vsel %vm2700_vm15, %v2657_v19, %v2770_v12  ;;  %v1202_v16 = vsel %vm1154_vm8, %v1149_v14, %v1145_v4  ;;  %v2043_v42 = vadd.f32 %v1756_v20, %v1587_v3  ;;  %v3976_v28 = vmul.f32 %v3113_v30, %v2041_v17 }
 0x1cc   :  { %2802 = vst.msk [vmem:[#allocation5 + $0x50] sm:$0xff] %vm2791_vm0, %v2771_v18  ;;  %v539_v49 = vrot.slane %v3461_v6, %v3140_v57  ;;  %v2044_v38 = vadd.f32 %v1876_v44, %v1588_v24  ;;  %v546_v15 = vrot.slane %v532_v13, %v3140_v57  ;;  %v1203_v47 = vsel %vm1156_vm9, %v1153_v56, %v1202_v16 }
 0x1cd   :  { %v3983_v34 = vmul.f32 %v3146_v60, %v2042_v26  ;;  %v2942_v40 = vrot.slane %v3918_v55, 9  ;;  %v3987_v51 = vmul.f32 %v3115_v31, %v2043_v42  ;;  %v2485_v35 = vrot.slane %v3976_v28, %v3143_v58 }
 0x1ce   :  { %v547_v63 = vcombine.high %v539_v49, %v539_v49  ;;  %v548_v61 = vcombine.high %v546_v15, %v546_v15  ;;  %v993_v54 = vrot.slane %v546_v15, %v3143_v58  ;;  %v3994_v10 = vmul.f32 %v3153_v1, %v2044_v38 }
 0x1cf   :  { %v1252_v2 = vsel %vm1228_vm10, %v1203_v47, 0.0  ;;  %v2943_v41 = vrot.slane %v3939_v39, 9  ;;  %v2890_v62 = vrot.slane %v539_v49, 9  ;;  %v736_v9 = vcombine.high %v3492_v0, %v3492_v0 }
 0x1d0   :  { %v989_v6 = vrot.slane %v547_v63, %v3143_v58  ;;  %v997_v36 = vrot.slane %v548_v61, %v3143_v58  ;;  %v743_v7 = vrot.slane %v3492_v0, %v3140_v57  ;;  %v2489_v23 = vrot.slane %v3983_v34, %v3143_v58 }
 0x1d1   :  { %v2944_v11 = vrot.slane %v3935_v53, 9  ;;  %v2891_v59 = vrot.slane %v547_v63, 9  ;;  %v2892_v8 = vrot.slane %v546_v15, 9  ;;  %v2493_v37 = vrot.slane %v3987_v51, %v3143_v58 }
 0x1d2   :  { %v1176_v43 = vsel %vm1154_vm8, %v993_v54, %v989_v6  ;;  %v2945_v52 = vrot.slane %v3955_v45, 9  ;;  %v1633_v46 = vadd.f32 %v2942_v40, %v3918_v55  ;;  %v2497_v21 = vrot.slane %v3994_v10, %v3143_v58 }
 0x1d3   :  { %v1177_v29 = vsel %vm1156_vm9, %v997_v36, %v1176_v43  ;;  %v1851_v0 = vrot.slane %v1252_v2, %v3140_v57  ;;  %v2893_v20 = vrot.slane %v548_v61, 9  ;;  %v1581_v25 = vadd.f32 %v2890_v62, %v539_v49 }
 0x1d4   :  { %v1239_v48 = vsel %vm1228_vm10, %v1177_v29, 0.0  ;;  %v750_v5 = vrot.slane %v736_v9, %v3140_v57  ;;  %v751_v22 = vcombine.high %v743_v7, %v743_v7  ;;  %v1634_v32 = vadd.f32 %v2943_v41, %v3939_v39 }
 0x1d5   :  { %v1747_v27 = vrot.slane %v1239_v48, %v3140_v57  ;;  %v1635_v55 = vadd.f32 %v2944_v11, %v3935_v53  ;;  %v1582_v4 = vadd.f32 %v2891_v59, %v547_v63  ;;  %v1583_v14 = vadd.f32 %v2892_v8, %v546_v15 }
 0x1d6   :  { %v752_v12 = vcombine.high %v750_v5, %v750_v5  ;;  %v1852_v50 = vcombine.high %v1851_v0, %v1851_v0  ;;  %v1584_v44 = vadd.f32 %v2893_v20, %v548_v61  ;;  %v1133_v13 = vrot.slane %v751_v22, %v3143_v58 }
 0x1d7   :  { %v1748_v19 = vcombine.high %v1747_v27, %v1747_v27  ;;  %v1873_v33 = vrot.slane %v1747_v27, 1  ;;  %v2037_v17 = vadd.f32 %v1747_v27, %v1581_v25  ;;  %v1137_v18 = vrot.slane %v750_v5, %v3143_v58 }
 0x1d8   :  { %v1141_v39 = vrot.slane %v752_v12, %v3143_v58  ;;  %v2938_v16 = vrot.slane %v743_v7, 9  ;;  %v2939_v42 = vrot.slane %v751_v22, 9  ;;  %v2940_v47 = vrot.slane %v750_v5, 9 }
 0x1d9   :  { %v1874_v3 = vrot.slane %v1748_v19, 1  ;;  %v2038_v56 = vadd.f32 %v1873_v33, %v1582_v4  ;;  %v2039_v24 = vadd.f32 %v1748_v19, %v1583_v14  ;;  %v2154_v26 = vmul.f32 %v3113_v30, %v2037_v17 }
 0x1da   :  { %v1200_v53 = vsel %vm1154_vm8, %v1137_v18, %v1133_v13  ;;  %v1899_v63 = vrot.slane %v1851_v0, 1  ;;  %v2941_v6 = vrot.slane %v752_v12, 9  ;;  %v1636_v36 = vadd.f32 %v2945_v52, %v3955_v45 }
 0x1db   :  { %v2040_v49 = vadd.f32 %v1874_v3, %v1584_v44  ;;  %v2155_v38 = vmul.f32 %v3146_v60, %v2038_v56  ;;  %v2156_v15 = vmul.f32 %v3115_v31, %v2039_v24  ;;  %v2469_v40 = vrot.slane %v2154_v26, %v3143_v58 }
 0x1dc   :  { %v1201_v61 = vsel %vm1156_vm9, %v1141_v39, %v1200_v53  ;;  %v1900_v43 = vrot.slane %v1852_v50, 1  ;;  %v1629_v9 = vadd.f32 %v2938_v16, %v743_v7  ;;  %v1630_v29 = vadd.f32 %v2939_v42, %v751_v22 }
 0x1dd   :  { %v2157_v54 = vmul.f32 %v3153_v1, %v2040_v49  ;;  %v2473_v2 = vrot.slane %v2155_v38, %v3143_v58  ;;  %v2477_v41 = vrot.slane %v2156_v15, %v3143_v58  ;;  %v1251_v62 = vsel %vm1228_vm10, %v1201_v61, 0.0 }
 0x1de   :  { %v1843_v11 = vrot.slane %v1251_v62, %v3140_v57  ;;  %v1631_v48 = vadd.f32 %v2940_v47, %v750_v5  ;;  %v2089_v14 = vadd.f32 %v1851_v0, %v1633_v46  ;;  %v2090_v19 = vadd.f32 %v1899_v63, %v1634_v32 }
 0x1df   :  { %v2481_v59 = vrot.slane %v2157_v54, %v3143_v58  ;;  %v2730_v8 = vsel %vm1154_vm8, %v2473_v2, %v2469_v40  ;;  %v1632_v45 = vadd.f32 %v2941_v6, %v752_v12  ;;  %v2091_v22 = vadd.f32 %v1852_v50, %v1635_v55 }
 0x1e0   :  { %v2731_v20 = vsel %vm1156_vm9, %v2477_v41, %v2730_v8  ;;  %v1844_v25 = vcombine.high %v1843_v11, %v1843_v11  ;;  %v1897_v27 = vrot.slane %v1843_v11, 1  ;;  %v2085_v4 = vadd.f32 %v1843_v11, %v1629_v9 }
 0x1e1   :  { %v2732_v33 = vsel %vm2692_vm11, %v2481_v59, %v2731_v20  ;;  %v2092_v5 = vadd.f32 %v1900_v43, %v1636_v36  ;;  %v2206_v55 = vmul.f32 %v3113_v30, %v2089_v14  ;;  %v2207_v12 = vmul.f32 %v3146_v60, %v2090_v19 }
 0x1e2   :  { %v2733_v57 = vsel %vm2694_vm12, %v2485_v35, %v2732_v33  ;;  %v1898_v7 = vrot.slane %v1844_v25, 1  ;;  %v2086_v52 = vadd.f32 %v1897_v27, %v1630_v29  ;;  %v2087_v17 = vadd.f32 %v1844_v25, %v1631_v48 }
 0x1e3   :  { %v2734_v44 = vsel %vm2696_vm13, %v2489_v23, %v2733_v57  ;;  %v2202_v46 = vmul.f32 %v3113_v30, %v2085_v4  ;;  %v2208_v13 = vmul.f32 %v3115_v31, %v2091_v22  ;;  %v2209_v30 = vmul.f32 %v3153_v1, %v2092_v5 }
 0x1e4   :  { %v2735_v0 = vsel %vm2698_vm14, %v2493_v37, %v2734_v44  ;;  %v2088_v28 = vadd.f32 %v1898_v7, %v1632_v45  ;;  %v2203_v35 = vmul.f32 %v3146_v60, %v2086_v52  ;;  %v2204_v32 = vmul.f32 %v3115_v31, %v2087_v17 }
 0x1e5   :  { %v2736_v34 = vsel %vm2700_vm15, %v2497_v21, %v2735_v0  ;;  %v2661_v23 = vrot.slane %v2202_v46, %v3143_v58  ;;  %v2677_v21 = vrot.slane %v2206_v55, %v3143_v58  ;;  %v2681_v3 = vrot.slane %v2207_v12, %v3143_v58 }
 0x1e6   :  { %2797 = vst.msk [vmem:[#allocation5 + $0x28] sm:$0xff] %vm2791_vm0, %v2736_v34  ;;  %v2205_v51 = vmul.f32 %v3153_v1, %v2088_v28  ;;  %v2665_v37 = vrot.slane %v2203_v35, %v3143_v58  ;;  %v2669_v50 = vrot.slane %v2204_v32, %v3143_v58  ;;  %v2685_v24 = vrot.slane %v2208_v13, %v3143_v58 }
 0x1e7   :  { %v2689_v1 = vrot.slane %v2209_v30, %v3143_v58 }
 0x1e8   :  { %v2673_v60 = vrot.slane %v2205_v51, %v3143_v58  ;;  %v2772_v10 = vsel %vm1154_vm8, %v2665_v37, %v2661_v23 }
 0x1e9   :  { %v2773_v18 = vsel %vm1156_vm9, %v2669_v50, %v2772_v10 }
 0x1ea   :  { %v2774_v56 = vsel %vm2692_vm11, %v2673_v60, %v2773_v18 }
 0x1eb   :  { %v2775_v31 = vsel %vm2694_vm12, %v2677_v21, %v2774_v56 }
 0x1ec   :  { %v2776_v26 = vsel %vm2696_vm13, %v2681_v3, %v2775_v31 }
 0x1ed   :  { %v2777_v39 = vsel %vm2698_vm14, %v2685_v24, %v2776_v26 }
 0x1ee   :  { %v2778_v53 = vsel %vm2700_vm15, %v2689_v1, %v2777_v39 }
 0x1ef   :  { %2803 = vst.msk [vmem:[#allocation5 + $0x58] sm:$0xff] %vm2791_vm0, %v2778_v53 }
 0x1f0   :  { %3056 = shalt.err (!%p3053_p12)
}
 0x1f1   :  { %s3057_s24 = scalar_lea.hbm %s4096_s1, 1536 }
 0x1f2   :  { %p3058_p13 = scmp.ne.s32.totalorder %s4096_s1, %s3057_s24  ;;  %p3061_p0 = scmp.lt.u32.totalorder %s3057_s24, %s4096_s1 }
 0x1f4   :  { %p3063_p1 = pnand %p3061_p0, %p3058_p13 }
 0x1f6   :  { %3066 = shalt.err (!%p3063_p1)
}
 0x1f7   :  { %2815 = dma.vmem_to_hbm [thread:$0]  %s2810_s20, 1536, %s4096_s1, [#allocation4], %s3072_s16, %s3072_s16, %s3073_s17  }
 0x1f8   :  { %3069 = dma.done.wait [#allocation4], 1536  }
 0x1f9   :  { %3070 = vsyncadd [#allocation4], 4294965760 }
 0x1fa   :  { %2819 = vsyncpa [#allocation3], 1 }
 0x1fb   :  { %2820 = vsyncpa [#allocation4], 1 }

</bundles_post_ra>
